<compile_context>
chip_gen: v7x
topology: tpu7x:2x2x1
jax: 0.10.0
libtpu: 0.0.40
codegen_flags: <defaults>
</compile_context>

<pallas_src>
import jax
import jax.numpy as jnp
from jax import lax
from jax.experimental import pallas as pl
from jax.experimental.pallas import tpu as pltpu

EPS = 1e-8  # matches F.cosine_similarity / _div_with_small_value eps


# ----------------------------------------------------------------------------
# Pallas kernel
# ----------------------------------------------------------------------------
def _mm_nt(a, b):
    # a: (M, K), b: (N, K) -> (M, N); contraction over K, f32 accumulation on
    # the MXU.  Operands stay in their native (possibly bf16) dtype.
    return lax.dot_general(a, b, (((1,), (1,)), ((), ())),
                           preferred_element_type=jnp.float32)


def _recip_pos(d):
    # 1 / max(d, EPS)  (torch _div_with_small_value denominator), computed with
    # the EUP approx reciprocal (rel. err ~2^-12, far inside the tolerance).
    return pl.reciprocal(jnp.maximum(d, EPS), approx=True)


def _mp_kernel(v1_ref, v2_ref, v2last_ref, w_ref, out_ref, attn_t_ref):
    f32 = jnp.float32
    Pp = w_ref.shape[1] // 4        # padded perspective count (multiple of 8)
    TL1 = v1_ref.shape[2]
    H = v1_ref.shape[3]
    L2 = v2_ref.shape[2]

    v1 = v1_ref[0, 0]               # (TL1, H)   native dtype (bf16 / f32)
    v2 = v2_ref[0, 0]               # (L2, H)
    v2_last = v2last_ref[0, 0]      # (1, H)
    w = w_ref[0]                    # (4Pp, H)   rows = [w1; w2; w3; w4]
    cdt = v1.dtype                  # matmul-operand / elementwise dtype

    ww = w * w                      # (4Pp, H)
    v1sq = v1 * v1
    v2sq = v2 * v2

    # All four v1-side squared norms from ONE fused matmul.
    s1_all = _mm_nt(v1sq, ww)       # (TL1, 4Pp)  f32

    ww1 = ww[0 * Pp:1 * Pp]         # sublane-aligned free views (Pp % 8 == 0)
    ww2 = ww[1 * Pp:2 * Pp]
    ww3 = ww[2 * Pp:3 * Pp]
    ww4 = ww[3 * Pp:4 * Pp]

    # ---- 1) full matching against the last h2 state -------------------------
    dot1 = _mm_nt(v1 * v2_last, ww1)                      # (TL1, Pp)
    s2_1 = _mm_nt(v2_last * v2_last, ww1)                 # (1, Pp)
    m_full = dot1 * lax.rsqrt(
        jnp.maximum(s1_all[:, 0 * Pp:1 * Pp] * s2_1, EPS * EPS))

    # ---- 2) max-pooling matching (deferred denominator) ---------------------
    r2 = _recip_pos(jnp.sqrt(_mm_nt(ww2, v2sq)))          # (Pp, L2)
    r1 = _recip_pos(jnp.sqrt(s1_all[:, 1 * Pp:2 * Pp]))   # (TL1, Pp)
    # LHS as (Pp, TL1, H): TL1 stays the sublane axis -> reshape is layout-free.
    lhs = (ww2[:, None, :] * v1[None, :, :]).reshape(Pp * TL1, H)
    num = _mm_nt(lhs, v2).reshape(Pp, TL1, L2)            # (Pp, TL1, L2)  f32
    m_mp = jnp.max(num * r2[:, None, :], axis=2)          # (Pp, TL1)
    m_mp = jnp.transpose(m_mp) * r1                       # (TL1, Pp)

    # ---- 3) attention matching ----------------------------------------------
    v1n = jnp.sqrt(jnp.sum(v1sq.astype(f32), axis=1, keepdims=True))   # (TL1,1)
    v2n = jnp.sqrt(jnp.sum(v2sq.astype(f32), axis=1))[None, :]         # (1, L2)
    a = _mm_nt(v1, v2)                                    # (TL1, L2)  f32
    attn = a * _recip_pos(v1n * v2n)                      # (TL1, L2)  f32
    attn_c = attn.astype(cdt)
    attn_sum = jnp.sum(attn, axis=1, keepdims=True)       # (TL1, 1)   f32

    attn_v2 = jnp.dot(attn_c, v2, preferred_element_type=f32)          # (TL1,H)
    attn_mean = (attn_v2 * _recip_pos(attn_sum)).astype(cdt)           # (TL1,H)

    dot3 = _mm_nt(v1 * attn_mean, ww3)
    s2_3 = _mm_nt(attn_mean * attn_mean, ww3)
    m_attn = dot3 * lax.rsqrt(
        jnp.maximum(s1_all[:, 2 * Pp:3 * Pp] * s2_3, EPS * EPS))

    # attn_h_max[i,h] = max_j attn[i,j] * v2[j,h]: rolled fori_loop over L2
    # chunks.  attn is staged transposed in VMEM scratch so each chunk keeps
    # TL1 on sublanes / H on lanes and the per-chunk reduce is a pure VPU max
    # over the leading dim (no per-chunk relayout of the big operands).
    attn_t_ref[...] = jnp.transpose(attn_c)               # (L2, TL1)
    CH = 16 if L2 >= 16 else L2
    nch = pl.cdiv(L2, CH)
    if L2 % CH == 0:
        def _start(i):
            return pl.multiple_of(i * CH, CH)
    else:
        def _start(i):                                    # overlap is fine for max
            return jnp.minimum(i * CH, L2 - CH)

    def _chunk_max(i, hmax):
        j0 = _start(i)
        at = attn_t_ref[pl.ds(j0, CH), :]                 # (CH, TL1)
        vt = v2_ref[0, 0, pl.ds(j0, CH), :]               # (CH, H)
        prod = at[:, :, None] * vt[:, None, :]            # (CH, TL1, H)
        return jnp.maximum(hmax, jnp.max(prod, axis=0))

    attn_h_max = lax.fori_loop(
        0, nch, _chunk_max, jnp.full((TL1, H), -jnp.inf, dtype=cdt))

    dot4 = _mm_nt(v1 * attn_h_max, ww4)
    s2_4 = _mm_nt(attn_h_max * attn_h_max, ww4)
    m_attn_max = dot4 * lax.rsqrt(
        jnp.maximum(s1_all[:, 3 * Pp:4 * Pp] * s2_4, EPS * EPS))

    # ---- stores: this grid step owns the whole (TL1, 4Pp) output block ------
    odt = out_ref.dtype
    out_ref[0, 0, :, 0 * Pp:1 * Pp] = m_full.astype(odt)
    out_ref[0, 0, :, 1 * Pp:2 * Pp] = m_mp.astype(odt)
    out_ref[0, 0, :, 2 * Pp:3 * Pp] = m_attn.astype(odt)
    out_ref[0, 0, :, 3 * Pp:4 * Pp] = m_attn_max.astype(odt)


# ----------------------------------------------------------------------------
# JAX glue (splitting, last-state gather, weight stacking/padding)
# ----------------------------------------------------------------------------
def get_last_state(h, mask):
    """h: (B, L, H), mask: (B, L) 0/1 -> (B, H): state at the last valid step."""
    lengths = jnp.sum(mask.astype(jnp.int32), axis=1)
    idx = jnp.maximum(lengths - 1, 0)
    return h[jnp.arange(h.shape[0]), idx]


def multi_perspective(h1, h2, h1_mask, h2_mask, params, *, block_l1=None):
    # NOTE: dropout is identity at inference time.
    # TODO(synk): training-mode dropout (pltpu.prng_*) not implemented.
    del h1_mask  # unused in the reference forward as well
    P, H = params["fw_1"].shape
    B, L1, _ = h1.shape
    L2 = h2.shape[1]
    out_dtype = h1.dtype
    cdt = h1.dtype                    # matmul-operand dtype (bf16 in production)

    Pp = ((P + 7) // 8) * 8           # pad perspectives to a sublane multiple

    def _pad(w):
        return jnp.pad(w, ((0, Pp - P), (0, 0)))

    h1_fw, h1_bw = h1[..., :H], h1[..., H:]
    h2_fw, h2_bw = h2[..., :H], h2[..., H:]
    h2_fw_last = get_last_state(h2_fw, h2_mask)            # (B, H)
    h2_bw_last = h2_bw[:, 0, :]                            # (B, H)

    v1 = jnp.stack([h1_fw, h1_bw], axis=0)                 # (2, B, L1, H)
    v2 = jnp.stack([h2_fw, h2_bw], axis=0)                 # (2, B, L2, H)
    v2_last = jnp.stack([h2_fw_last, h2_bw_last], axis=0)[:, :, None, :]
    w_all = jnp.stack([
        jnp.concatenate([_pad(params["fw_1"]), _pad(params["fw_2"]),
                         _pad(params["fw_3"]), _pad(params["fw_4"])], axis=0),
        jnp.concatenate([_pad(params["bw_1"]), _pad(params["bw_2"]),
                         _pad(params["bw_3"]), _pad(params["bw_4"])], axis=0),
    ], axis=0).astype(cdt)                                 # (2, 4Pp, H)

    if block_l1 is None:
        # 128 rows keeps the per-step working set well under v7x's 64 MiB VMEM.
        block_l1 = min(L1, 128)
    n_l1 = pl.cdiv(L1, block_l1)

    out_p = pl.pallas_call(
        _mp_kernel,
        out_shape=jax.ShapeDtypeStruct((B, 2, L1, 4 * Pp), out_dtype),
        grid_spec=pltpu.PrefetchScalarGridSpec(
            num_scalar_prefetch=0,
            # l innermost: v2 / v2_last / w blocks are reused (no re-DMA)
            # across the L1 tiles of one (batch, direction).
            grid=(B, 2, n_l1),
            in_specs=[
                pl.BlockSpec((1, 1, block_l1, H), lambda b, d, l: (d, b, l, 0)),
                pl.BlockSpec((1, 1, L2, H), lambda b, d, l: (d, b, 0, 0)),
                pl.BlockSpec((1, 1, 1, H), lambda b, d, l: (d, b, 0, 0)),
                pl.BlockSpec((1, 4 * Pp, H), lambda b, d, l: (d, 0, 0)),
            ],
            out_specs=pl.BlockSpec((1, 1, block_l1, 4 * Pp),
                                   lambda b, d, l: (b, d, l, 0)),
            scratch_shapes=[pltpu.VMEM((L2, block_l1), cdt)],
        ),
        compiler_params=pltpu.CompilerParams(
            dimension_semantics=("parallel", "parallel", "parallel"),
            vmem_limit_bytes=64 * 1024 * 1024),
    )(v1, v2, v2_last, w_all)

    # (B, 2, L1, 4, Pp) -> drop the perspective padding -> (B, L1, 8P) with the
    # [fw_full, fw_mp, fw_attn, fw_attnmax, bw_*...] column order.
    out = out_p.reshape(B, 2, L1, 4, Pp)[..., :P]
    out = jnp.transpose(out, (0, 2, 1, 3, 4)).reshape(B, L1, 8 * P)
    return out


# ----------------------------------------------------------------------------
# Pure-JAX reference (mirrors the torch code) for a correctness check
# ----------------------------------------------------------------------------
def _ref_div_small(n, d):
    return n / jnp.where(d > EPS, d, EPS)


def _ref_full_matching(v1, v2, w):
    wT = jnp.transpose(w)[None, None]                  # (1,1,H,P)
    v1e = v1[..., None] * wT                           # (B,L,H,P)
    if v2.ndim == 3:
        v2e = v2[..., None] * wT
    else:
        v2e = v2[:, None, :, None] * wT                # (B,1,H,P)
    dot = jnp.sum(v1e * v2e, axis=2)
    n1 = jnp.sqrt(jnp.sum(v1e * v1e, axis=2))
    n2 = jnp.sqrt(jnp.sum(v2e * v2e, axis=2))
    return dot / jnp.maximum(n1 * n2, EPS)


def _ref_maxpool(v1, v2, w):
    wp = w[None, :, None, :]                           # (1,P,1,H)
    v1e = v1[:, None] * wp                             # (B,P,L1,H)
    v2e = v2[:, None] * wp                             # (B,P,L2,H)
    n1 = jnp.sqrt(jnp.sum(v1e * v1e, axis=3, keepdims=True))
    n2 = jnp.sqrt(jnp.sum(v2e * v2e, axis=3, keepdims=True))
    n = jnp.einsum('bpih,bpjh->bpij', v1e, v2e)
    d = n1 * jnp.swapaxes(n2, 2, 3)
    m = _ref_div_small(n, d)
    m = jnp.transpose(m, (0, 2, 3, 1))                 # (B,L1,L2,P)
    return jnp.max(m, axis=2)


def _ref_attention(v1, v2, w, w2):
    v1n = jnp.sqrt(jnp.sum(v1 * v1, axis=2, keepdims=True))
    v2n = jnp.swapaxes(jnp.sqrt(jnp.sum(v2 * v2, axis=2, keepdims=True)), 1, 2)
    a = jnp.einsum('bih,bjh->bij', v1, v2)
    attn = _ref_div_small(a, v1n * v2n)
    attn_h = v2[:, None] * attn[..., None]             # (B,L1,L2,H)
    attn_mean = _ref_div_small(jnp.sum(attn_h, axis=2),
                               jnp.sum(attn, axis=2, keepdims=True))
    m1 = _ref_full_matching(v1, attn_mean, w)
    m2 = _ref_full_matching(v1, jnp.max(attn_h, axis=2), w2)
    return m1, m2


def multi_perspective_ref(h1, h2, h1_mask, h2_mask, params):
    del h1_mask
    P, H = params["fw_1"].shape
    h1_fw, h1_bw = h1[..., :H], h1[..., H:]
    h2_fw, h2_bw = h2[..., :H], h2[..., H:]
    h2_fw_last = get_last_state(h2_fw, h2_mask)
    h2_bw_last = h2_bw[:, 0, :]
    fm_f = _ref_full_matching(h1_fw, h2_fw_last, params["fw_1"])
    fm_b = _ref_full_matching(h1_bw, h2_bw_last, params["bw_1"])
    mp_f = _ref_maxpool(h1_fw, h2_fw, params["fw_2"])
    mp_b = _ref_maxpool(h1_bw, h2_bw, params["bw_2"])
    am_f, amx_f = _ref_attention(h1_fw, h2_fw, params["fw_3"], params["fw_4"])
    am_b, amx_b = _ref_attention(h1_bw, h2_bw, params["bw_3"], params["bw_4"])
    match_f = jnp.concatenate([fm_f, mp_f, am_f, amx_f], axis=2)
    match_b = jnp.concatenate([fm_b, mp_b, am_b, amx_b], axis=2)
    return jnp.concatenate([match_f, match_b], axis=2)


# ----------------------------------------------------------------------------
if __name__ == "__main__":
    B, L1, L2, H, P = 2, 24, 40, 64, 4

    key = jax.random.PRNGKey(0)
    k1, k2, kw = jax.random.split(key, 3)
    h1 = jax.random.normal(k1, (B, L1, 2 * H), dtype=jnp.float32)
    h2 = jax.random.normal(k2, (B, L2, 2 * H), dtype=jnp.float32)
    h1_mask = jnp.ones((B, L1), dtype=jnp.int32)
    lengths = jnp.array([L2, L2 - 3], dtype=jnp.int32)
    h2_mask = (jnp.arange(L2)[None, :] < lengths[:, None]).astype(jnp.int32)

    # kaiming_normal_ on a (P, H) matrix: fan_in = H, gain = sqrt(2)
    std = (2.0 / H) ** 0.5
    names = ["fw_1", "bw_1", "fw_2", "bw_2", "fw_3", "bw_3", "fw_4", "bw_4"]
    wkeys = jax.random.split(kw, len(names))
    params = {n: std * jax.random.normal(k, (P, H), dtype=jnp.float32)
              for n, k in zip(names, wkeys)}

    # block_l1=8 exercises the L1-tiling grid axis at these small sizes.
    out = multi_perspective(h1, h2, h1_mask, h2_mask, params, block_l1=8)
    out = jax.block_until_ready(out)
    assert out.shape == (B, L1, 8 * P), out.shape

    ref = multi_perspective_ref(h1, h2, h1_mask, h2_mask, params)
    max_err = float(jnp.max(jnp.abs(out - ref)))
    assert jnp.allclose(out, ref, atol=5e-2, rtol=5e-2), f"max_err={max_err}"

    print("KERNEL_OK")
</pallas_src>

<mosaic_0001>
module attributes {stable_mosaic.version = 11 : i64} {
  func.func @_mp_kernel(%arg0: i32, %arg1: i32, %arg2: i32, %arg3: memref<1x1x8x64xf32, #tpu.memory_space<vmem>>, %arg4: memref<1x1x40x64xf32, #tpu.memory_space<vmem>>, %arg5: memref<1x1x1x64xf32, #tpu.memory_space<vmem>>, %arg6: memref<1x32x64xf32, #tpu.memory_space<vmem>>, %arg7: memref<1x1x8x32xf32, #tpu.memory_space<vmem>>, %arg8: memref<40x8xf32, #tpu.memory_space<vmem>>) attributes {dimension_semantics = [#tpu.dimension_semantics<parallel>, #tpu.dimension_semantics<parallel>, #tpu.dimension_semantics<parallel>], iteration_bounds = array<i64: 2, 2, 3>, scalar_prefetch = 0 : i64, scratch_operands = 1 : i64, tpu.core_type = #tpu.core_type<tc>, window_params = [{transform_indices = @transform_0, window_bounds = array<i64: 1, 1, 8, 64>}, {transform_indices = @transform_1, window_bounds = array<i64: 1, 1, 40, 64>}, {transform_indices = @transform_2, window_bounds = array<i64: 1, 1, 1, 64>}, {transform_indices = @transform_3, window_bounds = array<i64: 1, 32, 64>}, {transform_indices = @transform_4, window_bounds = array<i64: 1, 1, 8, 32>}]} {
    %c0 = arith.constant 0 : index
    %c0_0 = arith.constant 0 : index
    %c0_1 = arith.constant 0 : index
    %c0_2 = arith.constant 0 : index
    %0 = vector.load %arg3[%c0, %c0_0, %c0_1, %c0_2] : memref<1x1x8x64xf32, #tpu.memory_space<vmem>>, vector<1x1x8x64xf32>
    %1 = vector.shape_cast %0 : vector<1x1x8x64xf32> to vector<8x64xf32>
    %c0_3 = arith.constant 0 : index
    %c0_4 = arith.constant 0 : index
    %c0_5 = arith.constant 0 : index
    %c0_6 = arith.constant 0 : index
    %2 = vector.load %arg4[%c0_3, %c0_4, %c0_5, %c0_6] : memref<1x1x40x64xf32, #tpu.memory_space<vmem>>, vector<1x1x40x64xf32>
    %3 = vector.shape_cast %2 : vector<1x1x40x64xf32> to vector<40x64xf32>
    %c0_7 = arith.constant 0 : index
    %c0_8 = arith.constant 0 : index
    %c0_9 = arith.constant 0 : index
    %c0_10 = arith.constant 0 : index
    %4 = vector.load %arg5[%c0_7, %c0_8, %c0_9, %c0_10] : memref<1x1x1x64xf32, #tpu.memory_space<vmem>>, vector<1x1x1x64xf32>
    %5 = vector.shape_cast %4 : vector<1x1x1x64xf32> to vector<1x64xf32>
    %c0_11 = arith.constant 0 : index
    %c0_12 = arith.constant 0 : index
    %c0_13 = arith.constant 0 : index
    %6 = vector.load %arg6[%c0_11, %c0_12, %c0_13] : memref<1x32x64xf32, #tpu.memory_space<vmem>>, vector<1x32x64xf32>
    %7 = vector.shape_cast %6 : vector<1x32x64xf32> to vector<32x64xf32>
    %8 = arith.mulf %7, %7 : vector<32x64xf32>
    %9 = arith.mulf %1, %1 : vector<8x64xf32>
    %10 = arith.mulf %3, %3 : vector<40x64xf32>
    %cst = arith.constant dense<0.000000e+00> : vector<8x32xf32>
    %11 = tpu.matmul %9, %8, %cst {dimension_numbers = #tpu.dot_dimension_numbers<[1], [1], [0], [0], [0, 0, 1, 0], [], []>} : vector<8x64xf32>, vector<32x64xf32>, vector<8x32xf32> -> vector<8x32xf32>
    %12 = vector.extract_strided_slice %8 {offsets = [0, 0], sizes = [8, 64], strides = [1, 1]} : vector<32x64xf32> to vector<8x64xf32>
    %13 = vector.extract_strided_slice %8 {offsets = [8, 0], sizes = [8, 64], strides = [1, 1]} : vector<32x64xf32> to vector<8x64xf32>
    %14 = vector.extract_strided_slice %8 {offsets = [16, 0], sizes = [8, 64], strides = [1, 1]} : vector<32x64xf32> to vector<8x64xf32>
    %15 = vector.extract_strided_slice %8 {offsets = [24, 0], sizes = [8, 64], strides = [1, 1]} : vector<32x64xf32> to vector<8x64xf32>
    %16 = vector.broadcast %5 : vector<1x64xf32> to vector<8x64xf32>
    %17 = arith.mulf %1, %16 : vector<8x64xf32>
    %cst_14 = arith.constant dense<0.000000e+00> : vector<8x8xf32>
    %18 = tpu.matmul %17, %12, %cst_14 {dimension_numbers = #tpu.dot_dimension_numbers<[1], [1], [0], [0], [0, 0, 1, 0], [], []>} : vector<8x64xf32>, vector<8x64xf32>, vector<8x8xf32> -> vector<8x8xf32>
    %19 = arith.mulf %5, %5 : vector<1x64xf32>
    %cst_15 = arith.constant dense<0.000000e+00> : vector<1x8xf32>
    %20 = tpu.matmul %19, %12, %cst_15 {dimension_numbers = #tpu.dot_dimension_numbers<[1], [1], [0], [0], [0, 0, 1, 0], [], []>} : vector<1x64xf32>, vector<8x64xf32>, vector<1x8xf32> -> vector<1x8xf32>
    %21 = vector.extract_strided_slice %11 {offsets = [0, 0], sizes = [8, 8], strides = [1, 1]} : vector<8x32xf32> to vector<8x8xf32>
    %22 = vector.broadcast %20 : vector<1x8xf32> to vector<8x8xf32>
    %23 = arith.mulf %21, %22 : vector<8x8xf32>
    %cst_16 = arith.constant 1.000000e-16 : f32
    %24 = vector.broadcast %cst_16 : f32 to vector<8x8xf32>
    %25 = arith.maximumf %23, %24 : vector<8x8xf32>
    %26 = math.rsqrt %25 : vector<8x8xf32>
    %27 = arith.mulf %18, %26 : vector<8x8xf32>
    %cst_17 = arith.constant dense<0.000000e+00> : vector<8x40xf32>
    %28 = tpu.matmul %13, %10, %cst_17 {dimension_numbers = #tpu.dot_dimension_numbers<[1], [1], [0], [0], [0, 0, 1, 0], [], []>} : vector<8x64xf32>, vector<40x64xf32>, vector<8x40xf32> -> vector<8x40xf32>
    %29 = math.sqrt %28 : vector<8x40xf32>
    %cst_18 = arith.constant 9.99999993E-9 : f32
    %30 = vector.broadcast %cst_18 : f32 to vector<8x40xf32>
    %31 = arith.maximumf %29, %30 : vector<8x40xf32>
    %32 = tpu.reciprocal %31 {approx = true} : vector<8x40xf32> -> vector<8x40xf32>
    %33 = vector.extract_strided_slice %11 {offsets = [0, 8], sizes = [8, 8], strides = [1, 1]} : vector<8x32xf32> to vector<8x8xf32>
    %34 = math.sqrt %33 : vector<8x8xf32>
    %cst_19 = arith.constant 9.99999993E-9 : f32
    %35 = vector.broadcast %cst_19 : f32 to vector<8x8xf32>
    %36 = arith.maximumf %34, %35 : vector<8x8xf32>
    %37 = tpu.reciprocal %36 {approx = true} : vector<8x8xf32> -> vector<8x8xf32>
    %38 = vector.shape_cast %13 : vector<8x64xf32> to vector<8x1x64xf32>
    %39 = vector.shape_cast %1 : vector<8x64xf32> to vector<1x8x64xf32>
    %40 = vector.broadcast %38 : vector<8x1x64xf32> to vector<8x8x64xf32>
    %41 = vector.broadcast %39 : vector<1x8x64xf32> to vector<8x8x64xf32>
    %42 = arith.mulf %40, %41 : vector<8x8x64xf32>
    %43 = vector.shape_cast %42 : vector<8x8x64xf32> to vector<64x64xf32>
    %cst_20 = arith.constant dense<0.000000e+00> : vector<64x40xf32>
    %44 = tpu.matmul %43, %3, %cst_20 {dimension_numbers = #tpu.dot_dimension_numbers<[1], [1], [0], [0], [0, 0, 1, 0], [], []>} : vector<64x64xf32>, vector<40x64xf32>, vector<64x40xf32> -> vector<64x40xf32>
    %45 = vector.shape_cast %44 : vector<64x40xf32> to vector<8x8x40xf32>
    %46 = vector.shape_cast %32 : vector<8x40xf32> to vector<8x1x40xf32>
    %47 = vector.broadcast %46 : vector<8x1x40xf32> to vector<8x8x40xf32>
    %48 = arith.mulf %45, %47 : vector<8x8x40xf32>
    %cst_21 = arith.constant dense<0xFF800000> : vector<8x8xf32>
    %49 = vector.multi_reduction <maximumf>, %48, %cst_21 [2] : vector<8x8x40xf32> to vector<8x8xf32>
    %50 = tpu.transpose %49, [1, 0] : vector<8x8xf32> -> vector<8x8xf32>
    %51 = arith.mulf %50, %37 : vector<8x8xf32>
    %cst_22 = arith.constant dense<0.000000e+00> : vector<8xf32>
    %52 = vector.multi_reduction <add>, %9, %cst_22 [1] : vector<8x64xf32> to vector<8xf32>
    %53 = vector.shape_cast %52 : vector<8xf32> to vector<8x1xf32>
    %54 = math.sqrt %53 : vector<8x1xf32>
    %cst_23 = arith.constant dense<0.000000e+00> : vector<40xf32>
    %55 = vector.multi_reduction <add>, %10, %cst_23 [1] : vector<40x64xf32> to vector<40xf32>
    %56 = math.sqrt %55 : vector<40xf32>
    %57 = vector.shape_cast %56 : vector<40xf32> to vector<1x40xf32>
    %cst_24 = arith.constant dense<0.000000e+00> : vector<8x40xf32>
    %58 = tpu.matmul %1, %3, %cst_24 {dimension_numbers = #tpu.dot_dimension_numbers<[1], [1], [0], [0], [0, 0, 1, 0], [], []>} : vector<8x64xf32>, vector<40x64xf32>, vector<8x40xf32> -> vector<8x40xf32>
    %59 = vector.broadcast %54 : vector<8x1xf32> to vector<8x40xf32>
    %60 = vector.broadcast %57 : vector<1x40xf32> to vector<8x40xf32>
    %61 = arith.mulf %59, %60 : vector<8x40xf32>
    %cst_25 = arith.constant 9.99999993E-9 : f32
    %62 = vector.broadcast %cst_25 : f32 to vector<8x40xf32>
    %63 = arith.maximumf %61, %62 : vector<8x40xf32>
    %64 = tpu.reciprocal %63 {approx = true} : vector<8x40xf32> -> vector<8x40xf32>
    %65 = arith.mulf %58, %64 : vector<8x40xf32>
    %cst_26 = arith.constant dense<0.000000e+00> : vector<8xf32>
    %66 = vector.multi_reduction <add>, %65, %cst_26 [1] : vector<8x40xf32> to vector<8xf32>
    %67 = vector.shape_cast %66 : vector<8xf32> to vector<8x1xf32>
    %cst_27 = arith.constant dense<0.000000e+00> : vector<8x64xf32>
    %68 = tpu.matmul %65, %3, %cst_27 {dimension_numbers = #tpu.dot_dimension_numbers<[1], [0], [0], [1], [0, 0, 1, 1], [], []>} : vector<8x40xf32>, vector<40x64xf32>, vector<8x64xf32> -> vector<8x64xf32>
    %cst_28 = arith.constant 9.99999993E-9 : f32
    %69 = vector.broadcast %cst_28 : f32 to vector<8x1xf32>
    %70 = arith.maximumf %67, %69 : vector<8x1xf32>
    %71 = tpu.reciprocal %70 {approx = true} : vector<8x1xf32> -> vector<8x1xf32>
    %72 = vector.broadcast %71 : vector<8x1xf32> to vector<8x64xf32>
    %73 = arith.mulf %68, %72 : vector<8x64xf32>
    %74 = arith.mulf %1, %73 : vector<8x64xf32>
    %cst_29 = arith.constant dense<0.000000e+00> : vector<8x8xf32>
    %75 = tpu.matmul %74, %14, %cst_29 {dimension_numbers = #tpu.dot_dimension_numbers<[1], [1], [0], [0], [0, 0, 1, 0], [], []>} : vector<8x64xf32>, vector<8x64xf32>, vector<8x8xf32> -> vector<8x8xf32>
    %76 = arith.mulf %73, %73 : vector<8x64xf32>
    %cst_30 = arith.constant dense<0.000000e+00> : vector<8x8xf32>
    %77 = tpu.matmul %76, %14, %cst_30 {dimension_numbers = #tpu.dot_dimension_numbers<[1], [1], [0], [0], [0, 0, 1, 0], [], []>} : vector<8x64xf32>, vector<8x64xf32>, vector<8x8xf32> -> vector<8x8xf32>
    %78 = vector.extract_strided_slice %11 {offsets = [0, 16], sizes = [8, 8], strides = [1, 1]} : vector<8x32xf32> to vector<8x8xf32>
    %79 = arith.mulf %78, %77 : vector<8x8xf32>
    %cst_31 = arith.constant 1.000000e-16 : f32
    %80 = vector.broadcast %cst_31 : f32 to vector<8x8xf32>
    %81 = arith.maximumf %79, %80 : vector<8x8xf32>
    %82 = math.rsqrt %81 : vector<8x8xf32>
    %83 = arith.mulf %75, %82 : vector<8x8xf32>
    %84 = tpu.transpose %65, [1, 0] : vector<8x40xf32> -> vector<40x8xf32>
    %c0_32 = arith.constant 0 : index
    %c0_33 = arith.constant 0 : index
    %85 = vector.load %arg8[%c0_32, %c0_33] : memref<40x8xf32, #tpu.memory_space<vmem>>, vector<40x8xf32>
    tpu.vector_store %arg8[%c0_32, %c0_33], %84 {strides = array<i32>} : memref<40x8xf32, #tpu.memory_space<vmem>>, vector<40x8xf32>,
    %cst_34 = arith.constant 0xFF800000 : f32
    %86 = vector.broadcast %cst_34 : f32 to vector<8x64xf32>
    %c0_i32 = arith.constant 0 : i32
    %c3_i32 = arith.constant 3 : i32
    %87 = arith.addi %c0_i32, %c3_i32 : i32
    %c1_i32 = arith.constant 1 : i32
    %88 = scf.for %arg9 = %c0_i32 to %87 step %c1_i32 iter_args(%arg10 = %86) -> (vector<8x64xf32>)  : i32 {
      %c16_i32 = arith.constant 16 : i32
      %111 = arith.muli %arg9, %c16_i32 : i32
      %c24_i32 = arith.constant 24 : i32
      %112 = arith.minsi %111, %c24_i32 : i32
      %113 = arith.index_cast %112 : i32 to index
      %c0_52 = arith.constant 0 : index
      %114 = vector.load %arg8[%113, %c0_52] : memref<40x8xf32, #tpu.memory_space<vmem>>, vector<16x8xf32>
      %c0_53 = arith.constant 0 : index
      %c0_54 = arith.constant 0 : index
      %115 = arith.index_cast %112 : i32 to index
      %c0_55 = arith.constant 0 : index
      %116 = vector.load %arg4[%c0_53, %c0_54, %115, %c0_55] : memref<1x1x40x64xf32, #tpu.memory_space<vmem>>, vector<1x1x16x64xf32>
      %117 = vector.shape_cast %116 : vector<1x1x16x64xf32> to vector<16x64xf32>
      %118 = vector.shape_cast %114 : vector<16x8xf32> to vector<16x8x1xf32>
      %119 = vector.shape_cast %117 : vector<16x64xf32> to vector<16x1x64xf32>
      %120 = vector.broadcast %118 : vector<16x8x1xf32> to vector<16x8x64xf32>
      %121 = vector.broadcast %119 : vector<16x1x64xf32> to vector<16x8x64xf32>
      %122 = arith.mulf %120, %121 : vector<16x8x64xf32>
      %cst_56 = arith.constant dense<0xFF800000> : vector<8x64xf32>
      %123 = vector.multi_reduction <maximumf>, %122, %cst_56 [0] : vector<16x8x64xf32> to vector<8x64xf32>
      %124 = arith.maximumf %arg10, %123 : vector<8x64xf32>
      scf.yield %124 : vector<8x64xf32>
    }
    %c3_i32_35 = arith.constant 3 : i32
    %89 = arith.mulf %1, %88 : vector<8x64xf32>
    %cst_36 = arith.constant dense<0.000000e+00> : vector<8x8xf32>
    %90 = tpu.matmul %89, %15, %cst_36 {dimension_numbers = #tpu.dot_dimension_numbers<[1], [1], [0], [0], [0, 0, 1, 0], [], []>} : vector<8x64xf32>, vector<8x64xf32>, vector<8x8xf32> -> vector<8x8xf32>
    %91 = arith.mulf %88, %88 : vector<8x64xf32>
    %cst_37 = arith.constant dense<0.000000e+00> : vector<8x8xf32>
    %92 = tpu.matmul %91, %15, %cst_37 {dimension_numbers = #tpu.dot_dimension_numbers<[1], [1], [0], [0], [0, 0, 1, 0], [], []>} : vector<8x64xf32>, vector<8x64xf32>, vector<8x8xf32> -> vector<8x8xf32>
    %93 = vector.extract_strided_slice %11 {offsets = [0, 24], sizes = [8, 8], strides = [1, 1]} : vector<8x32xf32> to vector<8x8xf32>
    %94 = arith.mulf %93, %92 : vector<8x8xf32>
    %cst_38 = arith.constant 1.000000e-16 : f32
    %95 = vector.broadcast %cst_38 : f32 to vector<8x8xf32>
    %96 = arith.maximumf %94, %95 : vector<8x8xf32>
    %97 = math.rsqrt %96 : vector<8x8xf32>
    %98 = arith.mulf %90, %97 : vector<8x8xf32>
    %c0_39 = arith.constant 0 : index
    %c0_40 = arith.constant 0 : index
    %c0_41 = arith.constant 0 : index
    %c0_42 = arith.constant 0 : index
    %99 = vector.load %arg7[%c0_39, %c0_40, %c0_41, %c0_42] : memref<1x1x8x32xf32, #tpu.memory_space<vmem>>, vector<1x1x8x8xf32>
    %100 = vector.shape_cast %99 : vector<1x1x8x8xf32> to vector<8x8xf32>
    %101 = vector.shape_cast %27 : vector<8x8xf32> to vector<1x1x8x8xf32>
    tpu.vector_store %arg7[%c0_39, %c0_40, %c0_41, %c0_42], %101 {strides = array<i32>} : memref<1x1x8x32xf32, #tpu.memory_space<vmem>>, vector<1x1x8x8xf32>,
    %c0_43 = arith.constant 0 : index
    %c0_44 = arith.constant 0 : index
    %c0_45 = arith.constant 0 : index
    %c8 = arith.constant 8 : index
    %102 = vector.load %arg7[%c0_43, %c0_44, %c0_45, %c8] : memref<1x1x8x32xf32, #tpu.memory_space<vmem>>, vector<1x1x8x8xf32>
    %103 = vector.shape_cast %102 : vector<1x1x8x8xf32> to vector<8x8xf32>
    %104 = vector.shape_cast %51 : vector<8x8xf32> to vector<1x1x8x8xf32>
    tpu.vector_store %arg7[%c0_43, %c0_44, %c0_45, %c8], %104 {strides = array<i32>} : memref<1x1x8x32xf32, #tpu.memory_space<vmem>>, vector<1x1x8x8xf32>,
    %c0_46 = arith.constant 0 : index
    %c0_47 = arith.constant 0 : index
    %c0_48 = arith.constant 0 : index
    %c16 = arith.constant 16 : index
    %105 = vector.load %arg7[%c0_46, %c0_47, %c0_48, %c16] : memref<1x1x8x32xf32, #tpu.memory_space<vmem>>, vector<1x1x8x8xf32>
    %106 = vector.shape_cast %105 : vector<1x1x8x8xf32> to vector<8x8xf32>
    %107 = vector.shape_cast %83 : vector<8x8xf32> to vector<1x1x8x8xf32>
    tpu.vector_store %arg7[%c0_46, %c0_47, %c0_48, %c16], %107 {strides = array<i32>} : memref<1x1x8x32xf32, #tpu.memory_space<vmem>>, vector<1x1x8x8xf32>,
    %c0_49 = arith.constant 0 : index
    %c0_50 = arith.constant 0 : index
    %c0_51 = arith.constant 0 : index
    %c24 = arith.constant 24 : index
    %108 = vector.load %arg7[%c0_49, %c0_50, %c0_51, %c24] : memref<1x1x8x32xf32, #tpu.memory_space<vmem>>, vector<1x1x8x8xf32>
    %109 = vector.shape_cast %108 : vector<1x1x8x8xf32> to vector<8x8xf32>
    %110 = vector.shape_cast %98 : vector<8x8xf32> to vector<1x1x8x8xf32>
    tpu.vector_store %arg7[%c0_49, %c0_50, %c0_51, %c24], %110 {strides = array<i32>} : memref<1x1x8x32xf32, #tpu.memory_space<vmem>>, vector<1x1x8x8xf32>,
    return
  }
  func.func @transform_0(%arg0: i32, %arg1: i32, %arg2: i32) -> (i32, i32, i32, i32) {
    %c0_i32 = arith.constant 0 : i32
    %c0_i32_0 = arith.constant 0 : i32
    return %arg1, %arg0, %arg2, %c0_i32 : i32, i32, i32, i32
  }
  func.func @transform_1(%arg0: i32, %arg1: i32, %arg2: i32) -> (i32, i32, i32, i32) {
    %c0_i32 = arith.constant 0 : i32
    %c0_i32_0 = arith.constant 0 : i32
    %c0_i32_1 = arith.constant 0 : i32
    return %arg1, %arg0, %c0_i32, %c0_i32_0 : i32, i32, i32, i32
  }
  func.func @transform_2(%arg0: i32, %arg1: i32, %arg2: i32) -> (i32, i32, i32, i32) {
    %c0_i32 = arith.constant 0 : i32
    %c0_i32_0 = arith.constant 0 : i32
    %c0_i32_1 = arith.constant 0 : i32
    return %arg1, %arg0, %c0_i32, %c0_i32_0 : i32, i32, i32, i32
  }
  func.func @transform_3(%arg0: i32, %arg1: i32, %arg2: i32) -> (i32, i32, i32) {
    %c0_i32 = arith.constant 0 : i32
    %c0_i32_0 = arith.constant 0 : i32
    %c0_i32_1 = arith.constant 0 : i32
    return %arg1, %c0_i32, %c0_i32_0 : i32, i32, i32
  }
  func.func @transform_4(%arg0: i32, %arg1: i32, %arg2: i32) -> (i32, i32, i32, i32) {
    %c0_i32 = arith.constant 0 : i32
    %c0_i32_0 = arith.constant 0 : i32
    return %arg0, %arg1, %arg2, %c0_i32 : i32, i32, i32, i32
  }
}

</mosaic_0001>

<bundles_post_ra>
// kernel: tpu_custom_call.1
= control target key start
LH: loop header
LB: loop body
LE: loop exit
PB: predicated region body
PF: predicated region fallthrough
CT: control target
= control target key end

     0   :  { %s4058_s0 = inlined_call_operand.hbm [shape: f32[2,2,24,64], index: 0, kind: input, shape index: {}]   ;;  %s4059_s1 = inlined_call_operand.hbm [shape: f32[2,2,40,64], index: 1, kind: input, shape index: {}]   ;;  %s4060_s2 = inlined_call_operand.hbm [shape: f32[2,2,1,64], index: 2, kind: input, shape index: {}]   ;;  %s4061_s3 = inlined_call_operand.hbm [shape: f32[2,32,64], index: 3, kind: input, shape index: {}]   ;;  %s4062_s4 = inlined_call_operand.hbm [shape: f32[2,2,24,32], index: 4, kind: output, shape index: {}]  }
   0x1   :  { %4090 = sst [smem:[#allocation30_spill]] %s4058_s0 }
   0x2   :  { %4091 = sst [smem:[#allocation31_spill]] %s4059_s1 }
   0x3   :  { %4092 = sst [smem:[#allocation32_spill]] %s4060_s2 }
   0x4   :  { %4093 = sst [smem:[#allocation33_spill]] %s4061_s3 }
   0x5   :  { %4094 = sst [smem:[#allocation34_spill]] %s4062_s4 }
   0x6   :  { %9 = vsyncpa [#allocation4], 0 }
   0x7   :  { %11 = vsyncpa [#allocation4 + $0x1], 0 }
   0x8   :  { %12 = vsyncpa [#allocation7], 0 }
   0x9   :  { %14 = vsyncpa [#allocation7 + $0x1], 0 }
   0xa   :  { %15 = vsyncpa [#allocation10], 0 }
   0xb   :  { %17 = vsyncpa [#allocation10 + $0x1], 0 }
   0xc   :  { %18 = vsyncpa [#allocation5], 0 }
   0xd   :  { %20 = vsyncpa [#allocation5 + $0x1], 0  ;;  %s3206_s15 = smov 0   ;;  %s3208_s16 = smov 0  }
   0xe   :  { %s3210_s17 = smov 0   ;;  %s3212_s18 = smov 0  }
   0xf   :  { %s3214_s19 = smov 0   ;;  %s3216_s20 = smov 0  }
  0x10   :  { %s3218_s21 = smov 0   ;;  %s3220_s22 = smov 0  }
  0x11   :  { %s3222_s23 = smov 0   ;;  %s3224_s24 = smov 0  }
  0x12   :  { %s3226_s25 = smov 0   ;;  %s3228_s26 = smov 0  }
  0x13   :  { %s3230_s27 = smov 0   ;;  %s3232_s28 = smov 0  }
  0x14   :  { %s3234_s29 = smov 0   ;;  %s3236_s30 = smov 0  }
  0x15 LB: > { %4095 = sst [smem:[#allocation16_spill]] %s3094_s15  ;;  %p4066_p0 = scmp.eq.s32.totalorder %s3154_s30, 0  ;;  %s3154_s30 = sphi %s3236_s30, %s26_s30   ;;  %s3150_s29 = sphi %s3234_s29, %s4178_s29   ;;  %s3146_s28 = sphi %s3232_s28, %s4177_s28   ;;  %s3142_s27 = sphi %s3230_s27, %s4176_s27   ;;  %s3138_s26 = sphi %s3228_s26, %s4175_s26   ;;  %s3134_s25 = sphi %s3226_s25, %s4174_s25   ;;  %s3130_s24 = sphi %s3224_s24, %s4173_s24   ;;  %s3126_s23 = sphi %s3222_s23, %s4172_s23   ;;  %s3122_s22 = sphi %s3220_s22, %s4171_s22   ;;  %s3118_s21 = sphi %s3218_s21, %s4170_s21   ;;  %s3114_s20 = sphi %s3216_s20, %s4169_s20   ;;  %s3110_s19 = sphi %s3214_s19, %s4168_s19   ;;  %s3106_s18 = sphi %s3212_s18, %s4161_s18   ;;  %s3102_s17 = sphi %s3210_s17, %s4167_s17   ;;  %s3098_s16 = sphi %s3208_s16, %s4166_s16   ;;  %s3094_s15 = sphi %s3206_s15, %s4165_s15  }
  0x16   : > { %4096 = sst [smem:[#allocation17_spill]] %s3110_s19  ;;  %p91_p1 = scmp.ne.s32.totalorder %s3114_s20, %s3110_s19 }
  0x17   : > { %4097 = sst [smem:[#allocation18_spill]] %s3118_s21  ;;  %p4065_p3 = scmp.lt.s32.totalorder %s3154_s30, 12 }
  0x18   : > { %4098 = sst [smem:[#allocation19_spill]] %s3130_s24  ;;  %p93_p4 = por %p91_p1, %p4066_p0 }
  0x19   : > { %4099 = sst [smem:[#allocation20_spill]] %s3134_s25  ;;  %s227_s6 = sand.u32 1, %s3154_s30  }
  0x1a   : > { %4100 = sst [smem:[#allocation21_spill]] %s3138_s26  ;;  %s4064_s7 = sand.u32 1, %s3114_s20  }
  0x1b   : > { %s2633_s8 = smul.u32 40, %s4064_s7  ;;  %p3301_p5 = pnand %p4065_p3, %p93_p4 }
  0x1c   : > { %s2634_s10 = smul.u32 5, %s3150_s29  ;;  %s4102_s1 = sld [smem:[#allocation31_spill]] }
  0x1d   : > { %s2635_s11 = smul.u32 10, %s3146_s28  ;;  %s231_s12 = scalar_lea.vmem [#allocation6], %s2633_s8 }
  0x1e   : > { %s240_s13 = sshll.u32 %s231_s12, 4  ;;  %p2386_p6 = scmp.ge.s32.totalorder %s3154_s30, 1  ;;  %s3307_s13 = int_to_ptr.vmem [resolvable:$true] %s240_s13 }
  0x1f   : > { %s237_s14 = sadd.s32 %s2635_s11, %s2634_s10  ;;  %s3315_s7 = scalar_lea.sflag [#allocation7], %s227_s6 }
  0x20   : > { %s2380_s5 = sshll.u32 %s237_s14, 7  ;;  %p4069_p8 = pneg %p3301_p5 }
  0x22   : > { %s3312_s26 = scalar_lea.hbm %s4102_s1, %s2380_s5  ;;  %s2861_s4 = scalar_lea.hbm %s4102_s1, 2560 }
  0x23   : > { %s2856_s25 = scalar_lea.hbm %s3312_s26, 640  ;;  %p2862_p11 = scmp.lt.u32.totalorder %s3312_s26, %s4102_s1 }
  0x24   : > { %p2857_p7 = scmp.ne.s32.totalorder %s3312_s26, %s2856_s25  ;;  %p2863_p12 = scmp.lt.u32.totalorder %s2861_s4, %s2856_s25 }
  0x25   : > { %p2865_p1 = scmp.lt.u32.totalorder %s2856_s25, %s3312_s26 }
  0x26   : > { %p2859_p9 = pnand %p4069_p8, %p2857_p7  ;;  %p2864_p13 = por %p2863_p12, %p2862_p11 }
  0x28   : > { %p2860_p10 = pneg %p2859_p9  ;;  %p2866_p4 = por %p2865_p1, %p2864_p13 }
  0x2a   : > { %p2867_p3 = pnand %p2866_p4, %p2860_p10 }
  0x2c   : > { %2870 = shalt.err (!%p2867_p3)
}
  0x2d   : > { %s2871_s6 = scalar_lea.vmem %s3307_s13, 640  ;;  %s3164_s11 = smov [#allocation6]  }
  0x2e   : > { %p2872_p7 = scmp.ne.s32.totalorder %s3307_s13, %s2871_s6  ;;  %s2876_s12 = sshll.u32 %s3164_s11, 4  ;;  %s2877_s12 = int_to_ptr.vmem [resolvable:$false] %s2876_s12 }
  0x2f   : > { %s2878_s14 = scalar_lea.vmem %s2877_s12, 1280  ;;  %p2879_p0 = scmp.lt.s32.totalorder %s3307_s13, %s2877_s12 }
  0x30   : > { %p2874_p9 = pnand %p2872_p7, %p4069_p8  ;;  %p2880_p11 = scmp.lt.s32.totalorder %s2878_s14, %s2871_s6 }
  0x32   : > { %p2875_p2 = pneg %p2874_p9  ;;  %p2881_p12 = por %p2880_p11, %p2879_p0 }
  0x34   : > { %p2882_p13 = pnand %p2881_p12, %p2875_p2 }
  0x36   : > { %2885 = shalt.err (!%p2882_p13)
}
  0x37   : > { %s4067_s25 = smov 128   ;;  %s4068_s8 = smov 8  }
  0x38   : > { %2655 = dma.hbm_to_vmem [thread:$0]  (!%p3301_p5), %s3312_s26, 640, %s3307_s13, %s3315_s7, %s4067_s25, %s4067_s25, %s4068_s8  }
  0x39   : > { %p288_p0 = scmp.lt.s32.totalorder %s3154_s30, 13  ;;  %s3354_s4 = sadd.s32 4294967295, %s3154_s30  }
  0x3a   : > { %4105 = sst [smem:[#allocation23_spill]] %s3354_s4  ;;  %s2375_s24 = sadd.s32 4294967294, %s3154_s30  }
  0x3b   : > { %p3349_p2 = pnand %p2386_p6, %p288_p0  ;;  %s38_s5 = sadd.s32 1, %s3142_s27 }
  0x3c   : > { %s41_s6 = sadd.s32 1, %s3146_s28  ;;  %p39_p3 = scmp.ge.s32.totalorder %s38_s5, 3 }
  0x3d   : > { %s4103_s10 = scalar_select %p3349_p2, 1, 0 }
  0x3e   : > { %s45_s26 = sadd.s32 1, %s3150_s29  ;;  %p63_p6 = scmp.ne.s32.totalorder %s3126_s23, %s3122_s22 }
  0x3f   : > { %4104 = sst [smem:[#allocation22_spill]] %s4103_s10  ;;  %s4180_s5 = smov (%p39_p3, %s38_s5), 0 }
  0x40   : > { %4106 = sst [smem:[#allocation24_spill]] %s4180_s5  ;;  %s4182_s6 = smov (!%p39_p3, %s41_s6), %s3146_s28 }
  0x41   : > { %s52_s11 = ssub.s32 %s3142_s27, %s4180_s5  ;;  %p4107_p10 = scmp.eq.s32.totalorder %s3154_s30, 0 }
  0x42   : > { %p43_p4 = scmp.ge.s32.totalorder %s4182_s6, 2  ;;  %p69_p7 = scmp.ne.s32.totalorder %s3122_s22, %s3118_s21 }
  0x43   : > { %p3373_p1 = por %p4107_p10, %p63_p6  ;;  %p4084_p9 = scmp.eq.s32.totalorder %s3354_s4, 0 }
  0x44   : > { %p179_p11 = scmp.eq.s32.totalorder %s3354_s4, 11  ;;  %s4184_s6 = smov (%p43_p4, %s4182_s6), 0 }
  0x45   : > { %4109 = sst [smem:[#allocation25_spill]] %s4184_s6  ;;  %s4186_s26 = smov (!%p43_p4, %s45_s26), %s3150_s29 }
  0x46   : > { %s3386_s14 = ssub.s32 %s3146_s28, %s4184_s6  ;;  %p3393_p12 = por %p4084_p9, %p69_p7 }
  0x47   : > { %p47_p13 = scmp.ge.s32.totalorder %s4186_s26, 2  ;;  %p4112_p0 = scmp.ne.s32.totalorder %s3110_s19, %s3106_s18 }
  0x48   : > { %s4110_s25 = scalar_select %p3393_p12, 1, 0 }
  0x49   : > { %p3402_p3 = por %p4112_p0, %p4084_p9  ;;  %p3410_p4 = por %p179_p11, %p63_p6 }
  0x4a   : > { %4111 = sst [smem:[#allocation26_spill]] %s4110_s25  ;;  %s4188_s26 = smov (%p47_p13, %s4186_s26), 0 }
  0x4b   : > { %s4113_s8 = scalar_select %p3402_p3, 1, 0 }
  0x4c   : > { %s4115_s13 = scalar_select %p3410_p4, 1, 0 }
  0x4d   : > { %4114 = sst [smem:[#allocation27_spill]] %s4113_s8  ;;  %p185_p8 = scmp.eq.s32.totalorder %s2375_s24, 11 }
  0x4e   : > { %4116 = sst [smem:[#allocation28_spill]] %s4115_s13  ;;  %s205_s1 = sand.u32 1, %s3126_s23  }
  0x4f   : > { %4117 = sst [smem:[#allocation29_spill]] %s4188_s26  ;;  %s50_s6 = ssub.s32 %s3150_s29, %s4188_s26 }
  0x50   : > { %s51_s18 = sor.u32 %s50_s6, %s3386_s14  ;;  %p3423_p0 = por %p185_p8, %p69_p7 }
  0x51   : > { %s53_s8 = sor.u32 %s52_s11, %s51_s18  ;;  %p82_p6 = scmp.eq.s32.totalorder %s51_s18, 0 }
  0x52   : > { %s4118_s5 = scalar_select %p3423_p0, 1, 0 }
  0x53   : > { %p54_p11 = scmp.eq.s32.totalorder %s53_s8, 0  ;;  %s2378_s19 = sshll.u32 %s205_s1, 3 }
  0x54   : > { %s4119_s13 = sadd.s32 1, %s3114_s20  ;;  %s4120_s10 = sadd.s32 1, %s3126_s23 }
  0x55   : > { %s3430_s25 = scalar_select %p82_p6, %s3114_s20, %s4119_s13  }
  0x56   : > { %s3435_s3 = scalar_select %p54_p11, %s3126_s23, %s4120_s10  }
  0x57   : > { %s2631_s24 = smul.u32 3, %s3150_s29  ;;  %s209_s4 = scalar_lea.vmem [#allocation3], %s2378_s19 }
  0x58   : > { %s2632_s26 = smul.u32 6, %s3146_s28  ;;  %s220_s15 = sshll.u32 %s209_s4, 4  ;;  %s3440_s15 = int_to_ptr.vmem [resolvable:$true] %s220_s15 }
  0x59   : > { %s214_s6 = sadd.s32 %s3142_s27, %s2631_s24  ;;  %p4121_p8 = scmp.lt.s32.totalorder %s3154_s30, 12 }
  0x5a   : > { %s216_s21 = sadd.s32 %s2632_s26, %s214_s6  ;;  %s4123_s0 = sld [smem:[#allocation30_spill]] }
  0x5b   : > { %p3446_p7 = pnand %p4121_p8, %p3373_p1  ;;  %s2379_s8 = sshll.u32 %s216_s21, 7 }
  0x5c   : > { %s206_s19 = scalar_lea.sflag [#allocation4], %s205_s1 }
  0x5d   : > { %p2888_p1 = pneg %p3446_p7 }
  0x60   : > { %s3453_s18 = scalar_lea.hbm %s4123_s0, %s2379_s8  ;;  %s2891_s12 = scalar_lea.hbm %s4123_s0, 1536 }
  0x61   : > { %s2886_s4 = scalar_lea.hbm %s3453_s18, 128  ;;  %p2892_p8 = scmp.lt.u32.totalorder %s3453_s18, %s4123_s0 }
  0x62   : > { %p2887_p13 = scmp.ne.s32.totalorder %s3453_s18, %s2886_s4  ;;  %p2893_p9 = scmp.lt.u32.totalorder %s2891_s12, %s2886_s4 }
  0x63   : > { %p2895_p0 = scmp.lt.u32.totalorder %s2886_s4, %s3453_s18 }
  0x64   : > { %p2889_p6 = pnand %p2888_p1, %p2887_p13  ;;  %p2894_p10 = por %p2893_p9, %p2892_p8 }
  0x66   : > { %p2890_p11 = pneg %p2889_p6  ;;  %p2896_p4 = por %p2895_p0, %p2894_p10 }
  0x68   : > { %p2897_p3 = pnand %p2896_p4, %p2890_p11 }
  0x6a   : > { %2900 = shalt.err (!%p2897_p3)
}
  0x6b   : > { %s2901_s1 = scalar_lea.vmem %s3440_s15, 128  ;;  %s3167_s8 = smov [#allocation3]  }
  0x6c   : > { %p2902_p13 = scmp.ne.s32.totalorder %s3440_s15, %s2901_s1  ;;  %s2906_s13 = sshll.u32 %s3167_s8, 4  ;;  %s2907_s13 = int_to_ptr.vmem [resolvable:$false] %s2906_s13 }
  0x6d   : > { %s2908_s10 = scalar_lea.vmem %s2907_s13, 256  ;;  %p2909_p2 = scmp.lt.s32.totalorder %s3440_s15, %s2907_s13 }
  0x6e   : > { %p2904_p6 = pnand %p2902_p13, %p2888_p1  ;;  %p2910_p9 = scmp.lt.s32.totalorder %s2908_s10, %s2901_s1 }
  0x70   : > { %p2905_p12 = pneg %p2904_p6  ;;  %p2911_p8 = por %p2910_p9, %p2909_p2 }
  0x72   : > { %p2912_p10 = pnand %p2911_p8, %p2905_p12 }
  0x74   : > { %2915 = shalt.err (!%p2912_p10)
}
  0x75   : > { %2652 = dma.hbm_to_vmem [thread:$0]  (!%p3446_p7), %s3453_s18, 128, %s3440_s15, %s206_s19  }
  0x76   : > { %s2381_s4 = sshll.u32 %s3146_s28, 1  ;;  %s4124_s26 = sand.u32 1, %s3114_s20  }
  0x77   : > { %s253_s21 = scalar_lea.vmem [#allocation8], %s4124_s26  ;;  %s258_s24 = sadd.s32 %s3150_s29, %s2381_s4 }
  0x78   : > { %s262_s12 = sshll.u32 %s253_s21, 4  ;;  %s2382_s6 = sshll.u32 %s258_s24, 4  ;;  %s3484_s12 = int_to_ptr.vmem [resolvable:$true] %s262_s12 }
  0x79   : > { %s4125_s2 = sld [smem:[#allocation32_spill]]  ;;  %p4126_p12 = pneg %p3301_p5 }
  0x7f   : > { %s260_s13 = scalar_lea.hbm %s4125_s2, %s2382_s6  ;;  %s2921_s18 = scalar_lea.hbm %s4125_s2, 64 }
  0x80   : > { %s2916_s11 = scalar_lea.hbm %s260_s13, 16  ;;  %p2922_p0 = scmp.lt.u32.totalorder %s260_s13, %s4125_s2 }
  0x81   : > { %p2917_p2 = scmp.ne.s32.totalorder %s260_s13, %s2916_s11  ;;  %p2923_p7 = scmp.lt.u32.totalorder %s2921_s18, %s2916_s11 }
  0x82   : > { %p2925_p11 = scmp.lt.u32.totalorder %s2916_s11, %s260_s13 }
  0x83   : > { %p2919_p3 = pnand %p2917_p2, %p4126_p12  ;;  %p2924_p1 = por %p2923_p7, %p2922_p0 }
  0x85   : > { %p2920_p4 = pneg %p2919_p3  ;;  %p2926_p13 = por %p2925_p11, %p2924_p1 }
  0x87   : > { %p2927_p6 = pnand %p2926_p13, %p2920_p4 }
  0x89   : > { %2930 = shalt.err (!%p2927_p6)
}
  0x8a   : > { %s2931_s4 = scalar_lea.vmem %s3484_s12, 16  ;;  %p4127_p8 = pmov %p4126_p12 }
  0x8b   : > { %p2932_p9 = scmp.ne.s32.totalorder %s3484_s12, %s2931_s4  ;;  %s3168_s21 = smov [#allocation8]  }
  0x8c   : > { %s2936_s24 = sshll.u32 %s3168_s21, 4  ;;  %s2937_s24 = int_to_ptr.vmem [resolvable:$false] %s2936_s24 }
  0x8d   : > { %p2934_p10 = pnand %p2932_p9, %p4127_p8  ;;  %s2938_s6 = scalar_lea.vmem %s2937_s24, 32 }
  0x8e   : > { %p2939_p12 = scmp.lt.s32.totalorder %s3484_s12, %s2937_s24  ;;  %p2940_p3 = scmp.lt.s32.totalorder %s2938_s6, %s2931_s4 }
  0x8f   : > { %p2935_p2 = pneg %p2934_p10 }
  0x90   : > { %p2941_p0 = por %p2940_p3, %p2939_p12 }
  0x92   : > { %p2942_p7 = pnand %p2941_p0, %p2935_p2 }
  0x94   : > { %2945 = shalt.err (!%p2942_p7)
}
  0x95   : > { %s4128_s1 = sld [smem:[#allocation16_spill]]  ;;  %s4129_s8 = sld [smem:[#allocation23_spill]] }
  0x96   : > { %2658 = dma.hbm_to_vmem [thread:$0]  (!%p3301_p5), %s260_s13, 16, %s3484_s12, %s3315_s7  }
  0x97   : > { %s138_s11 = sadd.s32 1, %s3102_s17  ;;  %p145_p4 = scmp.ne.s32.totalorder %s3102_s17, %s3098_s16 }
  0x98   : > { %p4130_p1 = scmp.eq.s32.totalorder %s3386_s14, 0  ;;  %p4131_p11 = scmp.eq.s32.totalorder %s3154_s30, 0 }
  0x99   : > { %s269_s9 = sand.u32 1, %s3102_s17   ;;  %s2438_s15 = sshll.u32 %s3146_s28, 9 }
  0x9a   : > { %s3514_s10 = scalar_select %p4130_p1, %s3102_s17, %s138_s11  }
  0x9b   : > { %p147_p13 = por %p145_p4, %p4131_p11  ;;  %p151_p6 = scmp.ne.s32.totalorder %s3098_s16, %s4128_s1 }
  0x9c   : > { %p4132_p9 = scmp.eq.s32.totalorder %s4129_s8, 0  ;;  %s2383_s19 = sshll.u32 %s269_s9, 5 }
  0x9d   : > { %s4134_s21 = sld [smem:[#allocation33_spill]]  ;;  %p4136_p5 = scmp.lt.s32.totalorder %s3154_s30, 12 }
  0x9e   : > { %p3524_p8 = por %p151_p6, %p4132_p9  ;;  %s273_s12 = scalar_lea.vmem [#allocation9], %s2383_s19 }
  0x9f   : > { %p3535_p10 = pnand %p4136_p5, %p147_p13  ;;  %s280_s13 = sshll.u32 %s273_s12, 4  ;;  %s3539_s13 = int_to_ptr.vmem [resolvable:$true] %s280_s13 }
  0xa0   : > { %s3541_s24 = scalar_lea.sflag [#allocation10], %s269_s9 }
  0xa1   : > { %p2948_p12 = pneg %p3535_p10 }
  0xa3   : > { %s4135_s6 = smov %s4134_s21  ;;  %s3531_s7 = scalar_lea.hbm %s4134_s21, %s2438_s15 }
  0xa4   : > { %s2946_s1 = scalar_lea.hbm %s3531_s7, 512  ;;  %s2951_s15 = scalar_lea.hbm %s4135_s6, 1024 }
  0xa5   : > { %p2947_p2 = scmp.ne.s32.totalorder %s3531_s7, %s2946_s1  ;;  %p2952_p7 = scmp.lt.u32.totalorder %s3531_s7, %s4135_s6 }
  0xa6   : > { %p2953_p4 = scmp.lt.u32.totalorder %s2951_s15, %s2946_s1  ;;  %p2955_p11 = scmp.lt.u32.totalorder %s2946_s1, %s3531_s7 }
  0xa7   : > { %p2949_p3 = pnand %p2948_p12, %p2947_p2 }
  0xa8   : > { %p2954_p1 = por %p2953_p4, %p2952_p7 }
  0xa9   : > { %p2950_p0 = pneg %p2949_p3 }
  0xaa   : > { %p2956_p13 = por %p2955_p11, %p2954_p1 }
  0xac   : > { %p2957_p6 = pnand %p2956_p13, %p2950_p0 }
  0xae   : > { %2960 = shalt.err (!%p2957_p6)
}
  0xaf   : > { %s2961_s9 = scalar_lea.vmem %s3539_s13, 512  ;;  %s3169_s19 = smov [#allocation9]  }
  0xb0   : > { %p2962_p9 = scmp.ne.s32.totalorder %s3539_s13, %s2961_s9  ;;  %s2966_s21 = sshll.u32 %s3169_s19, 4  ;;  %s2967_s21 = int_to_ptr.vmem [resolvable:$false] %s2966_s21 }
  0xb1   : > { %s2968_s12 = scalar_lea.vmem %s2967_s21, 1024  ;;  %p2969_p3 = scmp.lt.s32.totalorder %s3539_s13, %s2967_s21 }
  0xb2   : > { %p2964_p5 = pnand %p2962_p9, %p2948_p12  ;;  %p2970_p7 = scmp.lt.s32.totalorder %s2968_s12, %s2961_s9 }
  0xb4   : > { %p2965_p2 = pneg %p2964_p5  ;;  %p2971_p4 = por %p2970_p7, %p2969_p3 }
  0xb6   : > { %p2972_p1 = pnand %p2971_p4, %p2965_p2 }
  0xb8   : > { %2975 = shalt.err (!%p2972_p1)
}
  0xb9   : > { %s4138_s1 = smov 8   ;;  %s4139_s8 = smov 128  }
  0xba   : > { %2661 = dma.hbm_to_vmem [thread:$0]  (!%p3535_p10), %s3531_s7, 512, %s3539_s13, %s3541_s24, %s4139_s8, %s4139_s8, %s4138_s1  }
  0xbb   : > { %s4140_s11 = sld [smem:[#allocation22_spill]] }
  0xc1   : > { %p4141_p12 = scmp.ne.s32.totalorder %s4140_s11, 0 }
  0xc2   : > { %s4142_s15 = sld [smem:[#allocation26_spill]] (!%p4141_p12)  ;;  %s3575_s26 = sand.u32 (!%p4141_p12), 1, %s3122_s22  }
  0xc3   : > { %292 = sbr.rel (%p4141_p12) target bundleno = 1984 (0x7c0), region = 36  ;;  %s4088_s4 = sshll.u32 (!%p4141_p12), %s3575_s26, 3 }
  0xc4   : > { %s295_s9 = scalar_lea.sflag (!%p4141_p12), [#allocation4], %s3575_s26  ;;  %s3581_s14 = scalar_lea.vmem (!%p4141_p12), [#allocation3], %s4088_s4 }
  0xc8   : > { %p4143_p0 = scmp.ne.s32.totalorder (!%p4141_p12), %s4142_s15, 0 }
  0xca   : > { %3077 = dma.done.wait (%p4143_p0), %s295_s9, 128  }
  0xcb   : > { %3079 = vsyncadd (%p4143_p0), %s295_s9, 4294967168  ;;  %s4144_s7 = sld [smem:[#allocation23_spill]]  ;;  %s4145_s13 = sld [smem:[#allocation17_spill]] }
  0xcc   : > { %s4146_s24 = sld [smem:[#allocation27_spill]] }
  0xd1   : > { %s303_s19 = sand.u32 1, %s4144_s7   ;;  %s305_s21 = sand.u32 1, %s4145_s13  }
  0xd2   : > { %s2636_s12 = smul.u32 40, %s305_s21  ;;  %s304_s1 = scalar_lea.sflag [#allocation7], %s303_s19 }
  0xd3   : > { %p4147_p10 = scmp.ne.s32.totalorder %s4146_s24, 0 }
  0xd4   : > { %s3589_s8 = scalar_lea.vmem [#allocation6], %s2636_s12 }
  0xd5   : > { %3081 = dma.done.wait (%p4147_p10), %s304_s1, 656  }
  0xd6   : > { %3083 = vsyncadd (%p4147_p10), %s304_s1, 4294966640  ;;  %s320_s11 = sand.u32 1, %s3098_s16   ;;  %s315_s15 = scalar_lea.vmem [#allocation8], %s305_s21 }
  0xd7   : > { %s2388_s4 = sshll.u32 %s320_s11, 5  ;;  %s321_s9 = scalar_lea.sflag [#allocation10], %s320_s11 }
  0xd8   : > { %s3596_s0 = scalar_lea.vmem [#allocation9], %s2388_s4 }
  0xd9   : > { %3085 = dma.done.wait (%p3524_p8), %s321_s9, 512  }
  0xda   : > { %3087 = vsyncadd (%p3524_p8), %s321_s9, 4294966784  ;;  %v3170_v0 = vmov 0.0   ;;  %v3171_v1 = vmov 0.0|0.0   ;;  %v471_v2 = vlaneseq  ;;  %vm3172_vm0 = vmmov 0   ;;  %v370_v11 = vld [vmem:[%s3596_s0] sm:$0xff]  ;;  %v371_v12 = vld [vmem:[%s3596_s0 + $0x8] sm:$0xff] }
  0xdb   : > { %2498 = vmatprep.subr.mxu1 %v3170_v0  ;;  %2589 = vmatprep.subr.bf16.mxu0 %v3171_v1  ;;  %v3173_v3 = vmov 1966171168   ;;  %vm384_vm1 = vcmask 523264   ;;  %v3628_v13 = vld [vmem:[%s3581_s14] sm:$0xff]  ;;  %v374_v14 = vmul.f32 %v370_v11, %v370_v11  ;;  %v3630_v15 = vmul.f32 %v371_v12, %v371_v12  ;;  %v369_v16 = vld [vmem:[%s315_s15] sm:$0x1] }
  0xdc   : > { %2500 = vmatprep.mubr.msk.f32.mxu1 %vm3172_vm0, %v3170_v0  ;;  %2495 = vmatprep.mubr.msk.f32.mxu0 %vm3172_vm0, %v3170_v0  ;;  %v737_v4 = vunpack.c.l.s4 %v3173_v3  ;;  %v3608_v5 = vshrl.u32 %v471_v2, 7  ;;  %v3610_v6 = vand.u32 127, %v471_v2  ;;  %vm3621_vm2 = vmpackc.low %vm384_vm1, %vm384_vm1  ;;  %v364_v17 = vld [vmem:[%s3589_s8] sm:$0xff]  ;;  %v365_v18 = vld [vmem:[%s3589_s8 + $0x8] sm:$0xff]  ;;  %v550_v33 = vmul.f32 %v369_v16, %v369_v16  ;;  %s3175_s18 = smov 120   ;;  %s3176_s4 = smov 112  }
  0xdd   : > { %v372_v21 = vld [vmem:[%s3596_s0 + $0x10] sm:$0xff]  ;;  %v373_v22 = vld [vmem:[%s3596_s0 + $0x18] sm:$0xff]  ;;  %2499 = vmatpush3.xpose.msk.msra.mxu1 %vm384_vm1, %v374_v14  ;;  %v2590_v24 = vpack.c.bf16 %v3630_v15, %v374_v14  ;;  %v379_v25 = vmul.f32 %v364_v17, %v364_v17  ;;  %v380_v26 = vmul.f32 %v365_v18, %v365_v18  ;;  %v378_v44 = vmul.f32 %v3628_v13, %v3628_v13  ;;  %s3174_s0 = smov 16   ;;  %s4150_s14 = sshll.u32 %s3575_s26, 3 }
  0xde   : > { %v738_v7 = vunpack.c.0.s8 %v737_v4  ;;  %v3613_v8 = vsub.s32 0, %v3608_v5  ;;  %v3617_v9 = vsub.s32 %v3610_v6, %v3608_v5  ;;  %v366_v23 = vld [vmem:[%s3589_s8 + $0x10] sm:$0xff]  ;;  %2503 = vmatprep.subr.mxu1 %v3170_v0  ;;  %v3647_v29 = vmul.f32 %v372_v21, %v372_v21  ;;  %v367_v31 = vld [vmem:[%s3589_s8 + $0x18] sm:$0xff]  ;;  %v3663_v38 = vld [vmem:[%s3589_s8 + $0x20] sm:$0xff]  ;;  %s3864_s7 = scalar_lea.vmem [#allocation11], %s4150_s14  ;;  %s3868_s13 = smov 0  }
  0xdf   : > { %v381_v28 = vmul.f32 %v366_v23, %v366_v23  ;;  %2592 = vmatpush3.bf16.xpose.msk.msra.mxu0 %vm3621_vm2, %v2590_v24  ;;  %v3649_v30 = vmul.f32 %v373_v22, %v373_v22  ;;  %v1203_v34 = vsel %vm384_vm1, %v379_v25, 0.0  ;;  %v2598_v36 = vpack.c.bf16 %v380_v26, %v379_v25 }
  0xe0   : > { %v3635_v19 = vsub.s32 %v738_v7, %v3608_v5  ;;  %v474_v20 = vrot.slane %v369_v16, %v3613_v8  ;;  %2593 = vmatprep.subr.bf16.mxu0 %v3171_v1  ;;  %v382_v37 = vmul.f32 %v367_v31, %v367_v31  ;;  %1204 = vadd.xlane.f32.xlu0 %v1203_v34  ;;  %v1206_v41 = vsel %vm384_vm1, %v380_v26, 0.0 }
  0xe1   : > { %v1209_v35 = vsel %vm384_vm1, %v381_v28, 0.0  ;;  %v2594_v39 = vpack.c.bf16 %v3649_v30, %v3647_v29  ;;  %v383_v43 = vmul.f32 %v3663_v38, %v3663_v38  ;;  %v2605_v45 = vpack.c.bf16 %v365_v18, %v364_v17 }
  0xe2   : > { %v476_v27 = vmul.f32 %v474_v20, %v3628_v13  ;;  %v742_v32 = vrot.slane %v3630_v15, %v3635_v19  ;;  %1210 = vadd.xlane.f32.xlu1 %v1209_v35  ;;  %v1212_v42 = vsel %vm384_vm1, %v382_v37, 0.0  ;;  %v1193_v48 = vsel %vm384_vm1, %v378_v44, 0.0 }
  0xe3   : > { %v1215_v47 = vsel %vm384_vm1, %v383_v43, 0.0  ;;  %v2602_v49 = vpack.c.bf16 %v382_v37, %v381_v28  ;;  %v2611_v51 = vpack.c.bf16 %v367_v31, %v366_v23  ;;  %v735_v52 = vcombine.high %v3630_v15, %v3630_v15 }
  0xe4   : > { %2501 = vmatmul.mubr.msk.f32.vlgmr.msra.gmra.mrb[0].mxu1 %vm384_vm1, %v476_v27  ;;  %v758_v40 = vrot.slane %v742_v32, %v3635_v19  ;;  %1207 = vadd.xlane.f32.xlu0 %v1206_v41  ;;  %v750_v53 = vcombine.high %v742_v32, %v742_v32  ;;  %v3725_v11 = vadd.s32 4294967280, %v3610_v6  ;;  %v3728_v12 = vadd.s32 4294967288, %v3610_v6 }
  0xe5   : > { %2504 = vmatpush3.xpose.msk.msra.mxu1 %vm384_vm1, %v374_v14  ;;  %2505 = vmatprep.mubr.msk.f32.mxu1 %vm3172_vm0, %v3170_v0  ;;  %v749_v54 = vrot.slane %v735_v52, %v3635_v19  ;;  %v3746_v21 = vadd.s32 4294967272, %v3610_v6  ;;  %v3749_v22 = vadd.s32 4294967264, %v3610_v6  ;;  %vm1340_vm10 = vcmask 130112  }
  0xe6   : > { %2597 = vmatprep.subr.bf16.mxu1 %v3171_v1  ;;  %v787_v46 = vrot.slane %v758_v40, %v3613_v8  ;;  %1213 = vadd.xlane.f32.xlu1 %v1212_v42  ;;  %v772_v55 = vrot.slane %v750_v53, %v3635_v19  ;;  %v780_v56 = vcombine.high %v758_v40, %v758_v40  ;;  %vm1347_vm13 = vcmask 195712  }
  0xe7   : > { %2596 = vmatpush3.bf16.xpose.msk.msra.mxu0 %vm3621_vm2, %v2594_v39  ;;  %v751_v57 = vcombine.high %v749_v54, %v749_v54  ;;  %v765_v61 = vrot.slane %v749_v54, %v3635_v19  ;;  %v1338_v18 = vsub.s32 %v3728_v12, %v3608_v5  ;;  %v1352_v26 = vsub.s32 %v3746_v21, %v3608_v5 }
  0xe8   : > { %2506 = vmatmul.mubr.msk.f32.vlgmr.msra.gmra.mrb[2].mxu1 %vm384_vm1, %v550_v33  ;;  %2607 = vmatprep.subr.msk.bf16.mxu0 %vm3621_vm2, %v2605_v45  ;;  %v824_v50 = vmul.f32 %v787_v46, %v3628_v13  ;;  %v791_v58 = vrot.slane %v772_v55, %v3613_v8  ;;  %v782_v59 = vcombine.high %v772_v55, %v772_v55  ;;  %vm1354_vm15 = vcmask 261312  }
  0xe9   : > { %2600 = vmatpush3.bf16.xpose.msk.msra.mxu1 %vm3621_vm2, %v2598_v36  ;;  %2518 = vmatprep.mubr.msk.f32.mxu1 %vm3172_vm0, %v3170_v0  ;;  %v795_v60 = vrot.slane %v780_v56, %v3613_v8  ;;  %v779_v62 = vrot.slane %v751_v57, %v3635_v19  ;;  %v803_v4 = vrot.slane %v765_v61, %v3613_v8 }
  0xea   : > { %2601 = vmatprep.subr.bf16.mxu1 %v3171_v1  ;;  %1216 = vadd.xlane.f32.xlu0 %v1215_v47  ;;  %v825_v63 = vmul.f32 %v791_v58, %v3628_v13  ;;  %v799_v2 = vrot.slane %v782_v59, %v3613_v8  ;;  %v781_v7 = vcombine.high %v765_v61, %v765_v61 }
  0xeb   : > { %1194 = vadd.xlane.f32.xlu1 %v1193_v48  ;;  %v826_v3 = vmul.f32 %v795_v60, %v3628_v13  ;;  %v807_v14 = vrot.slane %v779_v62, %v3613_v8  ;;  %v783_v17 = vcombine.high %v779_v62, %v779_v62  ;;  %v828_v10 = vmul.f32 %v803_v4, %v3628_v13 }
  0xec   : > { %v827_v16 = vmul.f32 %v799_v2, %v3628_v13  ;;  %v811_v20 = vrot.slane %v781_v7, %v3613_v8 }
  0xed   : > { %v829_v23 = vmul.f32 %v807_v14, %v3628_v13  ;;  %v815_v24 = vrot.slane %v783_v17, %v3613_v8 }
  0xee   : > { %2496 = vmatmul.mubr.msk.f32.vlgmr.msra.gmra.mrb[0].mxu0 %vm384_vm1, %v378_v44  ;;  %v830_v25 = vmul.f32 %v811_v20, %v3628_v13 }
  0xef   : > { %2610 = vmatpush3.bf16.xpose.msk.msra.mxu0 %vm3621_vm2, %v2605_v45  ;;  %2531 = vmatprep.mubr.msk.f32.mxu0 %vm384_vm1, %v824_v50  ;;  %v831_v6 = vmul.f32 %v815_v24, %v3628_v13 }
  0xf0   : > { %2613 = vmatprep.subr.msk.bf16.mxu0 %vm3621_vm2, %v2611_v51 }
  0xf1   : > { %2604 = vmatpush3.bf16.xpose.msk.msra.mxu1 %vm3621_vm2, %v2602_v49 }
  0xf2   : > { %2516 = vmatprep.subr.mxu1 %v3170_v0 }
  0xf7   : > { %2616 = vmatpush3.bf16.xpose.msk.msra.mxu0 %vm3621_vm2, %v2611_v51 }
  0xf8   : > { %2529 = vmatprep.subr.msk.mxu0 %vm384_vm1, %v3663_v38 }
  0xf9   : > { %2517 = vmatpush3.xpose.msk.msra.mxu1 %vm384_vm1, %v383_v43 }
  0xfa   : > { %2617 = vmatprep.subr.bf16.mxu1 %v3171_v1 }
  0xfc   : > { %2519 = vmatmul.mubr.msk.f32.vlgmr.msra.gmra.mrb[4].mxu1 %vm384_vm1, %v3630_v15  ;;  %v1345_v15 = vsub.s32 %v3725_v11, %v3608_v5 }
  0xfd   : > { %2620 = vmatpush3.bf16.xpose.msk.msra.mxu1 %vm3621_vm2, %v2605_v45  ;;  %2553 = vmatprep.mubr.msk.f32.mxu1 %vm3172_vm0, %v3170_v0 }
  0xfe   : > { %2621 = vmatprep.subr.bf16.mxu1 %v3171_v1 }
  0xff   : > { %2530 = vmatpush3.xpose.msk.msra.mxu0 %vm384_vm1, %v3663_v38 }
 0x100   : > { %2625 = vmatprep.subr.bf16.mxu0 %v3171_v1 }
 0x102   : > { %2532 = vmatmul.mubr.msk.f32.vlgmr.msra.gmra.mrb[2].mxu0 %vm384_vm1, %v825_v63 }
 0x103   : > { %2534 = vmatprep.mubr.msk.f32.mxu0 %vm384_vm1, %v826_v3  ;;  %2627 = vmatpush3.bf16.msra.mxu0 %v2605_v45 }
 0x104   : > { %2628 = vmatprep.subr.bf16.mxu0 %v3171_v1  ;;  %v1359_v1 = vsub.s32 %v3749_v22, %v3608_v5 }
 0x105   : > { %2624 = vmatpush3.bf16.xpose.msk.msra.mxu1 %vm3621_vm2, %v2611_v51  ;;  %vm1361_vm2 = vcmask 326912  }
 0x106   : > { %2551 = vmatprep.subr.mxu1 %v3170_v0  ;;  %2535 = vmatmul.mubr.msk.f32.gmra.mrb[4].mxu0 %vm384_vm1, %v827_v16 }
 0x107   : > { %2537 = vmatprep.mubr.msk.f32.mxu0 %vm384_vm1, %v828_v10  ;;  %2630 = vmatpush3.bf16.msra.mxu0 %v2611_v51 }
 0x108   : > { %2564 = vmatprep.subr.mxu0 %v3170_v0 }
 0x10a   : > { %2538 = vmatmul.mubr.msk.f32.gmra.mrb[6].mxu0 %vm384_vm1, %v829_v23 }
 0x10b   : > { %2540 = vmatprep.mubr.msk.f32.mxu0 %vm384_vm1, %v830_v25  ;;  %2565 = vmatpush3.msra.mxu0 %v3663_v38 }
 0x10c   : > { %2574 = vmatprep.subr.mxu0 %v3170_v0 }
 0x10d   : > { %2552 = vmatpush3.xpose.msk.msra.mxu1 %vm384_vm1, %v3663_v38 }
 0x10e   : > { %2569 = vmatprep.subr.mxu1 %v3170_v0  ;;  %2541 = vmatmul.mubr.msk.f32.gmra.mrb[8].mxu0 %vm384_vm1, %v831_v6 }
 0x10f   : > { %2566 = vmatprep.mubr.msk.f32.mxu0 %vm3172_vm0, %v3170_v0 }
 0x110   : > { %2554 = vmatmul.mubr.msk.f32.vlgmr.msra.gmra.mrb[6].mxu1 %vm384_vm1, %v3628_v13 }
 0x111   : > { %2570 = vmatpush3.xpose.msk.msra.mxu1 %vm384_vm1, %v3647_v29  ;;  %2571 = vmatprep.mubr.msk.f32.mxu1 %vm3172_vm0, %v3170_v0 }
 0x16d   : > { %v1205_v27 = vpop.xlane.xlu0 %1204 }
 0x16e   : > { %2824 = vrsqrt.f32 %v1205_v27  ;;  %vm1220_vm3 = vcmp.eq.f32.partialorder %v1205_v27, inf  ;;  %v1223_v35 = vand.u32 2147483648, %v1205_v27  ;;  %vm1222_vm4 = vcmp.eq.f32.partialorder %v1205_v27, 0.0 }
 0x16f   : > { %v1211_v28 = vpop.xlane.xlu1 %1210 }
 0x170   : > { %2826 = vrsqrt.f32 %v1211_v28  ;;  %vm1234_vm5 = vcmp.eq.f32.partialorder %v1211_v28, inf  ;;  %v1237_v38 = vand.u32 2147483648, %v1211_v28  ;;  %vm1236_vm6 = vcmp.eq.f32.partialorder %v1211_v28, 0.0 }
 0x171   : > { %v1208_v31 = vpop.xlane.xlu0 %1207 }
 0x172   : > { %2828 = vrsqrt.f32 %v1208_v31  ;;  %vm1227_vm7 = vcmp.eq.f32.partialorder %v1208_v31, inf  ;;  %vm1229_vm8 = vcmp.eq.f32.partialorder %v1208_v31, 0.0  ;;  %v1230_v44 = vand.u32 2147483648, %v1208_v31 }
 0x173   : > { %v1214_v32 = vpop.xlane.xlu1 %1213 }
 0x174   : > { %2830 = vrsqrt.f32 %v1214_v32  ;;  %vm1241_vm9 = vcmp.eq.f32.partialorder %v1214_v32, inf  ;;  %v1244_v48 = vand.u32 2147483648, %v1214_v32  ;;  %vm1243_vm11 = vcmp.eq.f32.partialorder %v1214_v32, 0.0 }
 0x177   : > { %v1217_v33 = vpop.xlane.xlu0 %1216 }
 0x178   : > { %2832 = vrsqrt.f32 %v1217_v33  ;;  %v2825_v34 = vpop.eup %2824  ;;  %vm1248_vm12 = vcmp.eq.f32.partialorder %v1217_v33, inf  ;;  %v1251_v56 = vand.u32 2147483648, %v1217_v33  ;;  %vm1250_vm14 = vcmp.eq.f32.partialorder %v1217_v33, 0.0  ;;  %v1195_v11 = vpop.xlane.xlu1 %1194 }
 0x179   : > { %v1219_v37 = vmul.f32 %v2825_v34, %v1205_v27  ;;  %2834 = vrsqrt.f32 %v1195_v11  ;;  %v1201_v24 = vand.u32 2147483648, %v1195_v11 }
 0x17a   : > { %v2827_v36 = vpop.eup %2826 }
 0x17b   : > { %v1233_v39 = vmul.f32 %v2827_v36, %v1211_v28  ;;  %v1221_v40 = vsel %vm1220_vm3, %v1205_v27, %v1219_v37  ;;  %vm1198_vm3 = vcmp.eq.f32.partialorder %v1195_v11, inf }
 0x17c   : > { %v2829_v41 = vpop.eup %2828  ;;  %v1224_v42 = vsel %vm1222_vm4, %v1223_v35, %v1221_v40  ;;  %vm1200_vm4 = vcmp.eq.f32.partialorder %v1195_v11, 0.0 }
 0x17d   : > { %v1235_v43 = vsel %vm1234_vm5, %v1211_v28, %v1233_v39  ;;  %v1226_v47 = vmul.f32 %v2829_v41, %v1208_v31  ;;  %v1334_v50 = vrot.slane %v1224_v42, %v3617_v9 }
 0x17e   : > { %v2831_v45 = vpop.eup %2830  ;;  %v1238_v46 = vsel %vm1236_vm6, %v1237_v38, %v1235_v43 }
 0x17f   : > { %v1240_v49 = vmul.f32 %v2831_v45, %v1214_v32  ;;  %v1228_v51 = vsel %vm1227_vm7, %v1208_v31, %v1226_v47  ;;  %v1346_v53 = vrot.slane %v1238_v46, %v1345_v15  ;;  %vm1074_vm7 = vcmask 326656  }
 0x180   : > { %v1231_v54 = vsel %vm1229_vm8, %v1230_v44, %v1228_v51 }
 0x181   : > { %v1242_v55 = vsel %vm1241_vm9, %v1214_v32, %v1240_v49  ;;  %v1339_v57 = vrot.slane %v1231_v54, %v1338_v18 }
 0x182   : > { %v2833_v52 = vpop.eup %2832  ;;  %v1245_v58 = vsel %vm1243_vm11, %v1244_v48, %v1242_v55  ;;  %vm1141_vm11 = vcmask 1041409  }
 0x183   : > { %v1247_v59 = vmul.f32 %v2833_v52, %v1217_v33  ;;  %v1353_v60 = vrot.slane %v1245_v58, %v1352_v26  ;;  %v1341_v61 = vsel %vm1340_vm10, %v1339_v57, %v1334_v50  ;;  %v2835_v17 = vpop.eup %2834 }
 0x184   : > { %v1348_v2 = vsel %vm1347_vm13, %v1346_v53, %v1341_v61  ;;  %v1197_v23 = vmul.f32 %v2835_v17, %v1195_v11 }
 0x185   : > { %v1249_v62 = vsel %vm1248_vm12, %v1217_v33, %v1247_v59  ;;  %v1355_v4 = vsel %vm1354_vm15, %v1353_v60, %v1348_v2  ;;  %vm1143_vm12 = vcmask 1042434  }
 0x186   : > { %v1252_v63 = vsel %vm1250_vm14, %v1251_v56, %v1249_v62  ;;  %v1199_v25 = vsel %vm1198_vm3, %v1195_v11, %v1197_v23  ;;  %vm1145_vm14 = vcmask 1043459   ;;  %vm1149_vm3 = vcmask 1045509  }
 0x187   : > { %v1360_v3 = vrot.slane %v1252_v63, %v1359_v1  ;;  %v1202_v26 = vsel %vm1200_vm4, %v1201_v24, %v1199_v25  ;;  %vm1151_vm4 = vcmask 1046534  }
 0x189   : > { %v1362_v7 = vsel %vm1361_vm2, %v1360_v3, %v1355_v4  ;;  %vm1147_vm2 = vcmask 1044484  }
 0x18a   : > { %v1370_v27 = vmul.f32 %v1362_v7, %v1202_v26 }
 0x18c   : > { %v1371_v32 = vmax.f32 %v1370_v27, 1e-08 }
 0x1b7   : > { %v546_v12 = vpop.f32.mrb[0].mxu1 }
 0x1b8   : > { %v2502_v14 = vpop.f32.mrb[1].mxu1 }
 0x1bb   : > { %v620_v15 = vpop.f32.mrb[2].mxu1 }
 0x1bc   : > { %v2507_v16 = vpop.f32.mrb[3].mxu1  ;;  %v627_v18 = vrot.slane %v620_v15, %v3613_v8 }
 0x1c1   : > { %v3796_v10 = vpop.f32.mrb[0].mxu0 }
 0x1c2   : > { %v628_v20 = vmul.f32 %v627_v18, %v3796_v10  ;;  %v2497_v21 = vpop.f32.mrb[1].mxu0  ;;  %vm728_vm8 = vcmp.eq.f32.partialorder %v3796_v10, inf  ;;  %vm730_vm9 = vcmp.eq.f32.partialorder %v3796_v10, 0.0 }
 0x1c4   : > { %v629_v22 = vmax.f32 %v628_v20, 1e-16 }
 0x1c6   : > { %2836 = vrsqrt.f32 %v629_v22 }
 0x1cf   : > { %v713_v1 = vpop.f32.mrb[4].mxu1 }
 0x1d0   : > { %2838 = vrsqrt.f32 %v713_v1  ;;  %v2520_v6 = vpop.f32.mrb[5].mxu1  ;;  %v2837_v28 = vpop.eup %2836  ;;  %vm719_vm5 = vcmp.eq.f32.partialorder %v713_v1, inf  ;;  %v722_v37 = vand.u32 2147483648, %v713_v1  ;;  %vm721_vm6 = vcmp.eq.f32.partialorder %v713_v1, 0.0 }
 0x1d1   : > { %v3799_v31 = vmul.f32 %v2837_v28, %v546_v12  ;;  %2840 = vrcp.f32 %v1371_v32 }
 0x1d5   : > { %v2533_v33 = vpop.f32.mrb[2].mxu0 }
 0x1d6   : > { %v937_v35 = vpop.f32.mrb[3].mxu0 }
 0x1d9   : > { %v2536_v39 = vpop.f32.mrb[4].mxu0 }
 0x1da   : > { %v2839_v34 = vpop.eup %2838  ;;  %v947_v41 = vpop.f32.mrb[5].mxu0 }
 0x1db   : > { %v718_v36 = vmul.f32 %v2839_v34, %v713_v1  ;;  %v2841_v45 = vpop.eup %2840 }
 0x1dd   : > { %v720_v38 = vsel %vm719_vm5, %v713_v1, %v718_v36  ;;  %v2539_v43 = vpop.f32.mrb[6].mxu0  ;;  %vm1153_vm5 = vcmask 1047559  }
 0x1de   : > { %v723_v40 = vsel %vm721_vm6, %v722_v37, %v720_v38  ;;  %v957_v44 = vpop.f32.mrb[7].mxu0  ;;  %vm1645_vm6 = vcmask 64512  }
 0x1df   : > { %v724_v42 = vmax.f32 %v723_v40, 1e-08 }
 0x1e1   : > { %2842 = vrcp.f32 %v724_v42  ;;  %v2542_v49 = vpop.f32.mrb[8].mxu0 }
 0x1e2   : > { %v967_v51 = vpop.f32.mrb[9].mxu0 }
 0x1e3   : > { %v1322_v46 = vpop.f32.mrb[6].mxu1 }
 0x1e4   : > { %v3801_v47 = vmul.f32 %v2841_v45, %v1322_v46  ;;  %v2555_v48 = vpop.f32.mrb[7].mxu1 }
 0x1e6   : > { %2567 = vmatmul.mubr.msk.f32.vlgmr.msra.gmra.mrb[10].mxu0 %vm1074_vm7, %v3801_v47  ;;  %v1374_v50 = vsel %vm1074_vm7, %v3801_v47, 0.0 }
 0x1e7   : > { %1375 = vadd.xlane.f32.xlu0 %v1374_v50  ;;  %2575 = vmatpush3.xpose.msk.msra.mxu0 %vm384_vm1, %v3647_v29  ;;  %v731_v50 = vand.u32 2147483648, %v3796_v10 }
 0x1e8   : > { %2576 = vmatprep.mubr.msk.f32.mxu0 %vm3172_vm0, %v3170_v0 }
 0x1eb   : > { %v2843_v52 = vpop.eup %2842 }
 0x1ec   : > { %v984_v53 = vrot.slane %v2843_v52, %v3635_v19  ;;  %v977_v54 = vcombine.high %v2843_v52, %v2843_v52 }
 0x1ee   : > { %v992_v55 = vcombine.high %v984_v53, %v984_v53  ;;  %v1000_v56 = vrot.slane %v984_v53, %v3635_v19  ;;  %v991_v57 = vrot.slane %v977_v54, %v3635_v19 }
 0x1f0   : > { %v1014_v58 = vrot.slane %v992_v55, %v3635_v19  ;;  %v1029_v59 = vrot.slane %v1000_v56, %v3613_v8  ;;  %v1022_v60 = vcombine.high %v1000_v56, %v1000_v56  ;;  %v993_v61 = vcombine.high %v991_v57, %v991_v57 }
 0x1f1   : > { %v1007_v29 = vrot.slane %v991_v57, %v3635_v19 }
 0x1f2   : > { %v1033_v62 = vrot.slane %v1014_v58, %v3613_v8  ;;  %v1066_v63 = vmul.f32 %v1029_v59, %v937_v35  ;;  %v1024_v2 = vcombine.high %v1014_v58, %v1014_v58  ;;  %v1037_v3 = vrot.slane %v1022_v60, %v3613_v8 }
 0x1f3   : > { %v1021_v4 = vrot.slane %v993_v61, %v3635_v19  ;;  %v1045_v7 = vrot.slane %v1007_v29, %v3613_v8  ;;  %v1023_v11 = vcombine.high %v1007_v29, %v1007_v29 }
 0x1f4   : > { %v1067_v12 = vmul.f32 %v2533_v33, %v1033_v62  ;;  %v1041_v14 = vrot.slane %v1024_v2, %v3613_v8  ;;  %v1068_v15 = vmul.f32 %v1037_v3, %v947_v41  ;;  %v1075_v16 = vsel %vm1074_vm7, %v1066_v63, -inf }
 0x1f5   : > { %v1049_v17 = vrot.slane %v1021_v4, %v3613_v8  ;;  %v1070_v18 = vmul.f32 %v1045_v7, %v957_v44  ;;  %v1025_v20 = vcombine.high %v1021_v4, %v1021_v4  ;;  %1076 = vmax.xlane.f32.xlu0 %v1075_v16  ;;  %v1053_v21 = vrot.slane %v1023_v11, %v3613_v8 }
 0x1f6   : > { %v1069_v23 = vmul.f32 %v2536_v39, %v1041_v14  ;;  %v1078_v1 = vsel %vm1074_vm7, %v1067_v12, -inf  ;;  %v1081_v27 = vsel %vm1074_vm7, %v1068_v15, -inf }
 0x1f7   : > { %v1071_v22 = vmul.f32 %v2539_v43, %v1049_v17  ;;  %v1057_v24 = vrot.slane %v1025_v20, %v3613_v8  ;;  %v1072_v25 = vmul.f32 %v1053_v21, %v967_v51  ;;  %v1087_v26 = vsel %vm1074_vm7, %v1070_v18, -inf }
 0x1f8   : > { %v1084_v28 = vsel %vm1074_vm7, %v1069_v23, -inf }
 0x1f9   : > { %v1073_v6 = vmul.f32 %v2542_v49, %v1057_v24  ;;  %1079 = vmax.xlane.f32.xlu0 %v1078_v1  ;;  %v1090_v32 = vsel %vm1074_vm7, %v1071_v22, -inf  ;;  %v1093_v33 = vsel %vm1074_vm7, %v1072_v25, -inf }
 0x1fb   : > { %v1096_v34 = vsel %vm1074_vm7, %v1073_v6, -inf }
 0x1fd   : > { %1082 = vmax.xlane.f32.xlu0 %v1081_v27 }
 0x201   : > { %1085 = vmax.xlane.f32.xlu0 %v1084_v28 }
 0x205   : > { %1091 = vmax.xlane.f32.xlu0 %v1090_v32 }
 0x209   : > { %1094 = vmax.xlane.f32.xlu0 %v1093_v33 }
 0x20d   : > { %1097 = vmax.xlane.f32.xlu0 %v1096_v34 }
 0x274   : > { %v1376_v35 = vpop.xlane.xlu0 %1375 }
 0x275   : > { %v1450_v36 = vmax.f32 %v1376_v35, 1e-08  ;;  %v3866_v35 = vmov -inf  }
 0x277   : > { %2844 = vrcp.f32 %v1450_v36 }
 0x278   : > { %2846 = vrsqrt.f32 %v3796_v10 }
 0x281   : > { %v2845_v37 = vpop.eup %2844 }
 0x282   : > { %v2847_v48 = vpop.eup %2846  ;;  %v1077_v59 = vpop.xlane.xlu0 %1076 }
 0x283   : > { %v727_v49 = vmul.f32 %v2847_v48, %v3796_v10  ;;  %v1112_v4 = vrot.slane %v1077_v59, %v3617_v9 }
 0x285   : > { %v729_v51 = vsel %vm728_vm8, %v3796_v10, %v727_v49 }
 0x286   : > { %v732_v52 = vsel %vm730_vm9, %v731_v50, %v729_v51  ;;  %v1080_v60 = vpop.xlane.xlu0 %1079 }
 0x287   : > { %v733_v53 = vmax.f32 %v732_v52, 1e-08  ;;  %v1116_v2 = vrot.slane %v1080_v60, %v3617_v9 }
 0x289   : > { %2848 = vrcp.f32 %v733_v53  ;;  %v1142_v11 = vsel %vm1141_vm11, %v1116_v2, %v1112_v4 }
 0x28a   : > { %v1083_v61 = vpop.xlane.xlu0 %1082 }
 0x28b   : > { %v1120_v3 = vrot.slane %v1083_v61, %v3617_v9 }
 0x28d   : > { %v1144_v14 = vsel %vm1143_vm12, %v1120_v3, %v1142_v11 }
 0x28e   : > { %v1086_v29 = vpop.xlane.xlu0 %1085 }
 0x28f   : > { %v1124_v7 = vrot.slane %v1086_v29, %v3617_v9 }
 0x292   : > { %v1092_v62 = vpop.xlane.xlu0 %1091 }
 0x293   : > { %v2849_v54 = vpop.eup %2848  ;;  %v1132_v17 = vrot.slane %v1092_v62, %v3617_v9 }
 0x296   : > { %v1095_v63 = vpop.xlane.xlu0 %1094 }
 0x297   : > { %v1136_v18 = vrot.slane %v1095_v63, %v3617_v9 }
 0x29a   : > { %v1098_v15 = vpop.xlane.xlu0 %1097 }
 0x29b   : > { %v1140_v21 = vrot.slane %v1098_v15, %v3617_v9 }
 0x2b9   : > { %v1446_v38 = vpop.f32.mrb[10].mxu0 }
 0x2ba   : > { %v1452_v39 = vmul.f32 %v2845_v37, %v1446_v38  ;;  %v2568_v40 = vpop.f32.mrb[11].mxu0 }
 0x2bc   : > { %v1453_v41 = vmul.f32 %v1452_v39, %v3628_v13  ;;  %v1527_v42 = vmul.f32 %v1452_v39, %v1452_v39 }
 0x2be   : > { %2572 = vmatmul.mubr.msk.f32.vlgmr.msra.gmra.mrb[8].mxu1 %vm384_vm1, %v1453_v41  ;;  %2577 = vmatmul.mubr.msk.f32.vlgmr.msra.gmra.mrb[12].mxu0 %vm384_vm1, %v1527_v42 }
 0x391   : > { %v1523_v43 = vpop.f32.mrb[8].mxu1  ;;  %v1597_v44 = vpop.f32.mrb[12].mxu0 }
 0x392   : > { %v2573_v45 = vpop.f32.mrb[9].mxu1  ;;  %1602 = vrot.lane.b32.xlu1 %v1597_v44, %s3174_s0  ;;  %v2578_v46 = vpop.f32.mrb[13].mxu0 }
 0x3b6   : > { %1088 = vmax.xlane.f32.xlu1 %v1087_v26 }
 0x3c7   : > { %1189 = vrot.lane.b32.xlu1 %v2849_v54, %s3175_s18 }
 0x404   : > { %v1603_v55 = vpop.permute.xlu1 %1602 }
 0x405   : > { %v1605_v56 = vmul.f32 %v1603_v55, %v3796_v10 }
 0x407   : > { %v1606_v57 = vmax.f32 %v1605_v56, 1e-16 }
 0x409   : > { %2850 = vrsqrt.f32 %v1606_v57 }
 0x413   : > { %v2851_v58 = vpop.eup %2850 }
 0x414   : > { %1609 = vrot.lane.b32.xlu1 %v2851_v58, %s3176_s4 }
 0x43d   : > { %1613 = vxpose.xlu1.b32.start.end [1/1] (short) (narrow) %v3801_v47, 40  ;;  %v1146_v47 = vsel %vm1145_vm14, %v1124_v7, %v1144_v14 }
 0x443   : > { %v1089_v12 = vpop.xlane.xlu1 %1088 }
 0x444   : > { %v1128_v16 = vrot.slane %v1089_v12, %v3617_v9 }
 0x446   : > { %v1148_v20 = vsel %vm1147_vm2, %v1128_v16, %v1146_v47 }
 0x447   : > { %v1150_v23 = vsel %vm1149_vm3, %v1132_v17, %v1148_v20  ;;  %v1190_v25 = vpop.permute.xlu1 %1189 }
 0x448   : > { %v1152_v22 = vsel %vm1151_vm4, %v1136_v18, %v1150_v23 }
 0x449   : > { %v1154_v24 = vsel %vm1153_vm5, %v1140_v21, %v1152_v22 }
 0x44a   : > { %1156 = vxpose.xlu0.b32.start.end [1/1] (short) (narrow) %v1154_v24, 8 }
 0x486   : > { %v1610_v26 = vpop.permute.xlu1 %1609 }
 0x487   : > { %v3853_v1 = vmul.f32 %v1610_v26, %v1523_v43 }
 0x4bd   : > { %v1629_v6 = vpop.trf.xlu1 }
 0x4be   : > { %1646 = vst.msk [vmem:[#allocation2] sm:$0xff] %vm1645_vm6, %v1629_v6 }
 0x4c1   : > { %v1630_v27 = vpop.trf.xlu1 }
 0x4c2   : > { %1647 = vst.msk [vmem:[#allocation2 + $0x8] sm:$0xff] %vm1645_vm6, %v1630_v27 }
 0x4c5   : > { %v1631_v28 = vpop.trf.xlu1 }
 0x4c6   : > { %1648 = vst.msk [vmem:[#allocation2 + $0x10] sm:$0xff] %vm1645_vm6, %v1631_v28 }
 0x4c9   : > { %v1632_v9 = vpop.trf.xlu1 }
 0x4ca   : > { %1649 = vst.msk [vmem:[#allocation2 + $0x18] sm:$0xff] %vm1645_vm6, %v1632_v9  ;;  %v1172_v32 = vpop.trf.xlu0 }
 0x4cb   : > { %v3859_v33 = vmul.f32 %v1190_v25, %v1172_v32 }
 0x4cd   : > { %v1633_v34 = vpop.trf.xlu1 }
 0x4ce   : > { %1650 = vst.msk [vmem:[#allocation2 + $0x20] sm:$0xff] %vm1645_vm6, %v1633_v34 }
 0x4cf LB: >> { %s2429_s24 = sshll.u32 %s3162_s13, 4  ;;  %v1683_v36 = vsub.s32 2, %v3608_v5  ;;  %v1690_v37 = vsub.s32 3, %v3608_v5  ;;  %v1676_v38 = vsub.s32 1, %v3608_v5  ;;  %v1704_v44 = vsub.s32 5, %v3608_v5  ;;  %s1656_s13 = sadd.s32 1, %s3162_s13   ;;  %s3162_s13 = sphi %s3868_s13, %s1656_s13   ;;  %v3158_v35 = vphi %v3866_v35, %v4151_v35  }
 0x4d0   : >> { %p1659_p8 = scmp.lt.s32.totalorder %s2429_s24, 24  ;;  %v1697_v45 = vsub.s32 4, %v3608_v5  ;;  %v1718_v49 = vsub.s32 7, %v3608_v5  ;;  %v1711_v50 = vsub.s32 6, %v3608_v5  ;;  %p1653_p11 = scmp.ge.s32.totalorder %s1656_s13, 3  }
 0x4d1   : > { %2584 = vmatprep.subr.mxu0 (%p1653_p11), %v3170_v0  ;;  %2586 = vmatprep.mubr.msk.f32.mxu0 (%p1653_p11), %vm3172_vm0, %v3170_v0  ;;  %2167 = vst.msk [vmem:[%s3864_s7] sm:$0xff] (%p1653_p11), %vm1645_vm6, %v3799_v31  ;;  %s3177_s12 = smov (%p1653_p11), 24   ;;  %s3178_s1 = smov (%p1653_p11), 8  }
 0x4d2   : >> { %s4190_s24 = smov (!%p1659_p8, %s2429_s24), 24  ;;  %2585 = vmatpush3.xpose.msk.msra.mxu0 (%p1653_p11), %vm384_vm1, %v3649_v30  ;;  %2579 = vmatprep.subr.mxu1 (%p1653_p11), %v3170_v0  ;;  %s4153_s11 = sld [smem:[#allocation21_spill]] (%p1653_p11) }
 0x4d3   : >> { %s1661_s19 = scalar_lea.vmem [#allocation2], %s4190_s24  ;;  %s1664_s21 = scalar_lea.vmem %s3589_s8, %s4190_s24 [#allocation6]  ;;  %2580 = vmatpush3.xpose.msk.msra.mxu1 (%p1653_p11), %vm384_vm1, %v3649_v30  ;;  %2581 = vmatprep.mubr.msk.f32.mxu1 (%p1653_p11), %vm3172_vm0, %v3170_v0 }
 0x4d4   : >> { %v1665_v29 = vld [vmem:[%s1664_s21] sm:$0xff]  ;;  %v1666_v4 = vld [vmem:[%s1664_s21 + $0x8] sm:$0xff]  ;;  %s4152_s8 = sld [smem:[#allocation20_spill]] (%p1653_p11)  ;;  %s4154_s15 = sld [smem:[#allocation19_spill]] (%p1653_p11) }
 0x4d5   : >> { %v1662_v39 = vld [vmem:[%s1661_s19] sm:$0xff]  ;;  %v1663_v53 = vld [vmem:[%s1661_s19 + $0x8] sm:$0xff]  ;;  %v1781_v62 = vcombine.high %v1665_v29, %v1665_v29  ;;  %v1788_v7 = vrot.slane %v1665_v29, %v3635_v19  ;;  %v1830_v14 = vcombine.high %v1666_v4, %v1666_v4  ;;  %v1837_v15 = vrot.slane %v1666_v4, %v3635_v19  ;;  %s3179_s9 = smov (%p1653_p11), 104   ;;  %s2201_s19 = sshll.u32 (%p1653_p11), %s3864_s7, 4  ;;  %s3974_s19 = int_to_ptr.vmem [resolvable:$true] %s2201_s19 }
 0x4d6   : >> { %v1684_v40 = vrot.slane %v1662_v39, %v1683_v36  ;;  %v1670_v41 = vrot.slane %v1662_v39, %v3613_v8  ;;  %v1691_v42 = vrot.slane %v1662_v39, %v1690_v37  ;;  %v1677_v43 = vrot.slane %v1662_v39, %v1676_v38  ;;  %s4156_s2 = sld [smem:[#allocation34_spill]] (%p1653_p11) }
 0x4d7   : >> { %v1705_v46 = vrot.slane %v1662_v39, %v1704_v44  ;;  %v1698_v48 = vrot.slane %v1662_v39, %v1697_v45  ;;  %v1719_v51 = vrot.slane %v1662_v39, %v1718_v49  ;;  %v1712_v52 = vrot.slane %v1662_v39, %v1711_v50 }
 0x4d8   : >> { %1686 = vbcast.lane.b32.xlu1 %v1684_v40, 256  ;;  %1672 = vbcast.lane.b32.xlu0 %v1670_v41, 256  ;;  %v1733_v54 = vrot.slane %v1663_v53, %v1676_v38  ;;  %v1726_v55 = vrot.slane %v1663_v53, %v3613_v8  ;;  %v1747_v56 = vrot.slane %v1663_v53, %v1690_v37  ;;  %s2638_s4 = smul.u32 (%p1653_p11), 6, %s4153_s11  ;;  %s3180_s11 = smov (%p1653_p11), [#allocation11]  }
 0x4d9   : >> { %v1740_v57 = vrot.slane %v1663_v53, %v1683_v36  ;;  %v1761_v58 = vrot.slane %v1663_v53, %v1704_v44  ;;  %v1754_v59 = vrot.slane %v1663_v53, %v1697_v45  ;;  %v1775_v60 = vrot.slane %v1663_v53, %v1718_v49 }
 0x4da   : >> { %v1768_v61 = vrot.slane %v1663_v53, %v1711_v50  ;;  %v1795_v3 = vrot.slane %v1781_v62, %v3635_v19  ;;  %v1796_v16 = vcombine.high %v1788_v7, %v1788_v7  ;;  %v1844_v20 = vrot.slane %v1830_v14, %v3635_v19  ;;  %s2637_s18 = smul.u32 (%p1653_p11), 3, %s4152_s8  ;;  %s2976_s8 = scalar_lea.vmem (%p1653_p11), %s3974_s19, 128 }
 0x4db   : >> { %v1845_v21 = vcombine.high %v1837_v15, %v1837_v15  ;;  %v1804_v23 = vrot.slane %v1788_v7, %v3635_v19  ;;  %v1853_v9 = vrot.slane %v1837_v15, %v3635_v19  ;;  %p2977_p13 = scmp.ne.s32.totalorder (%p1653_p11), %s3974_s19, %s2976_s8 }
 0x4dc   : >> { %1693 = vbcast.lane.b32.xlu1 %v1691_v42, 256  ;;  %1679 = vbcast.lane.b32.xlu0 %v1677_v43, 256  ;;  %v1797_v47 = vcombine.high %v1795_v3, %v1795_v3  ;;  %v1818_v22 = vrot.slane %v1796_v16, %v3635_v19  ;;  %v1811_v25 = vrot.slane %v1795_v3, %v3635_v19  ;;  %s2195_s14 = sadd.s32 (%p1653_p11), %s4154_s15, %s2637_s18  ;;  %s2980_s15 = sshll.u32 (%p1653_p11), %s3180_s11, 4  ;;  %s2981_s15 = int_to_ptr.vmem [resolvable:$false] %s2980_s15 }
 0x4dd   : >> { %v1846_v32 = vcombine.high %v1844_v20, %v1844_v20  ;;  %v1867_v34 = vrot.slane %v1845_v21, %v3635_v19  ;;  %v1826_v36 = vcombine.high %v1804_v23, %v1804_v23  ;;  %v1882_v37 = vrot.slane %v1804_v23, %v3613_v8  ;;  %s2197_s13 = sadd.s32 (%p1653_p11), %s2638_s4, %s2195_s14  ;;  %p2983_p2 = scmp.lt.s32.totalorder (%p1653_p11), %s3974_s19, %s2981_s15 }
 0x4de   : >> { %v1825_v24 = vrot.slane %v1797_v47, %v3635_v19  ;;  %v1827_v27 = vcombine.high %v1811_v25, %v1811_v25  ;;  %v1828_v38 = vcombine.high %v1818_v22, %v1818_v22  ;;  %v1875_v39 = vcombine.high %v1853_v9, %v1853_v9  ;;  %s2435_s24 = sshll.u32 (%p1653_p11), %s2197_s13, 7 }
 0x4df   : >> { %v1886_v40 = vrot.slane %v1818_v22, %v3613_v8  ;;  %v1898_v42 = vrot.slane %v1811_v25, %v3613_v8  ;;  %v1877_v43 = vcombine.high %v1867_v34, %v1867_v34  ;;  %v1874_v49 = vrot.slane %v1846_v32, %v3635_v19  ;;  %s3972_s6 = scalar_lea.hbm (%p1653_p11), %s4156_s2, %s2435_s24 }
 0x4e0   : >> { %1707 = vbcast.lane.b32.xlu1 %v1705_v46, 256  ;;  %1700 = vbcast.lane.b32.xlu0 %v1698_v48, 256  ;;  %v1829_v26 = vcombine.high %v1825_v24, %v1825_v24  ;;  %v1902_v41 = vrot.slane %v1825_v24, %v3613_v8  ;;  %v1906_v45 = vrot.slane %v1827_v27, %v3613_v8 }
 0x4e1   : >> { %v1860_v50 = vrot.slane %v1844_v20, %v3635_v19  ;;  %v1890_v53 = vrot.slane %v1826_v36, %v3613_v8  ;;  %v1934_v16 = vrot.slane %v1874_v49, %v3613_v8 }
 0x4e2   : >> { %v1910_v44 = vrot.slane %v1829_v26, %v3613_v8 }
 0x4e3   : >> { %v1930_v47 = vrot.slane %v1860_v50, %v3613_v8 }
 0x4e4   : >> { %1721 = vbcast.lane.b32.xlu1 %v1719_v51, 256  ;;  %1714 = vbcast.lane.b32.xlu0 %v1712_v52, 256  ;;  %v1918_v51 = vrot.slane %v1867_v34, %v3613_v8  ;;  %v1914_v52 = vrot.slane %v1853_v9, %v3613_v8 }
 0x4e8   : >> { %1735 = vbcast.lane.b32.xlu1 %v1733_v54, 256  ;;  %1728 = vbcast.lane.b32.xlu0 %v1726_v55, 256  ;;  %v1894_v54 = vrot.slane %v1828_v38, %v3613_v8  ;;  %v1878_v55 = vcombine.high %v1874_v49, %v1874_v49 }
 0x4ec   : >> { %1749 = vbcast.lane.b32.xlu1 %v1747_v56, 256  ;;  %1742 = vbcast.lane.b32.xlu0 %v1740_v57, 256  ;;  %v1876_v56 = vcombine.high %v1860_v50, %v1860_v50 }
 0x4f0   : >> { %1763 = vbcast.lane.b32.xlu1 %v1761_v58, 256  ;;  %1756 = vbcast.lane.b32.xlu0 %v1754_v59, 256  ;;  %v1926_v59 = vrot.slane %v1877_v43, %v3613_v8 }
 0x4f4   : >> { %1777 = vbcast.lane.b32.xlu1 %v1775_v60, 256  ;;  %1770 = vbcast.lane.b32.xlu0 %v1768_v61, 256  ;;  %v1922_v60 = vrot.slane %v1875_v39, %v3613_v8 }
 0x4f8   : > { %2169 = vrot.lane.b32.xlu1 (%p1653_p11), %v3859_v33, %s3178_s1 }
 0x4fc   : > { %2174 = vrot.lane.b32.xlu1 (%p1653_p11), %v3853_v1, %s3174_s0  ;;  %s4155_s0 = sld [smem:[#allocation28_spill]] (%p1653_p11) }
 0x502   : > { %p4157_p6 = scmp.ne.s32.totalorder (%p1653_p11), %s4155_s0, 0 }
 0x504   : > { %p2978_p9 = pnand (%p1653_p11), %p2977_p13, %p4157_p6 }
 0x506   : > { %p2979_p5 = pneg (%p1653_p11), %p2978_p9 }
 0x54a   : >> { %v1687_v63 = vpop.permute.xlu1 %1686  ;;  %v1673_v2 = vpop.permute.xlu0 %1672 }
 0x54b   : >> { %v1959_v61 = vmul.f32 %v1882_v37, %v1673_v2  ;;  %v1961_v20 = vmul.f32 %v1890_v53, %v1687_v63 }
 0x54d   : >> { %v1975_v24 = vsel %vm384_vm1, %v1959_v61, -inf  ;;  %v1977_v34 = vsel %vm384_vm1, %v1961_v20, -inf }
 0x54e   : >> { %v1694_v11 = vpop.permute.xlu1 %1693  ;;  %v1680_v12 = vpop.permute.xlu0 %1679 }
 0x54f   : >> { %v1960_v29 = vmul.f32 %v1886_v40, %v1680_v12  ;;  %v1962_v21 = vmul.f32 %v1894_v54, %v1694_v11 }
 0x551   : >> { %v1976_v25 = vsel %vm384_vm1, %v1960_v29, -inf  ;;  %v1978_v36 = vsel %vm384_vm1, %v1962_v21, -inf }
 0x552   : >> { %v1708_v17 = vpop.permute.xlu1 %1707  ;;  %v1701_v18 = vpop.permute.xlu0 %1700 }
 0x553   : >> { %v1964_v57 = vmul.f32 %v1902_v41, %v1708_v17  ;;  %v1963_v58 = vmul.f32 %v1898_v42, %v1701_v18  ;;  %v1942_v17 = vrot.slane %v1878_v55, %v3613_v8  ;;  %v1938_v18 = vrot.slane %v1876_v56, %v3613_v8 }
 0x555   : >> { %v1981_v23 = vsel %vm384_vm1, %v1964_v57, -inf  ;;  %v1979_v2 = vsel %vm384_vm1, %v1963_v58, -inf }
 0x556   : >> { %v1722_v6 = vpop.permute.xlu1 %1721  ;;  %v1715_v28 = vpop.permute.xlu0 %1714  ;;  %v1982_v37 = vmax.f32 %v1976_v25, %v1981_v23  ;;  %v1980_v38 = vmax.f32 %v1975_v24, %v1979_v2 }
 0x557   : >> { %v1966_v62 = vmul.f32 %v1910_v44, %v1722_v6  ;;  %v1965_v3 = vmul.f32 %v1906_v45, %v1715_v28 }
 0x559   : >> { %v1985_v26 = vsel %vm384_vm1, %v1966_v62, -inf  ;;  %v1983_v6 = vsel %vm384_vm1, %v1965_v3, -inf }
 0x55a   : >> { %v1736_v46 = vpop.permute.xlu1 %1735  ;;  %v1729_v48 = vpop.permute.xlu0 %1728  ;;  %v1986_v43 = vmax.f32 %v1978_v36, %v1985_v26  ;;  %v1984_v44 = vmax.f32 %v1977_v34, %v1983_v6 }
 0x55b   : >> { %v1968_v14 = vmul.f32 %v1918_v51, %v1736_v46  ;;  %v1967_v15 = vmul.f32 %v1914_v52, %v1729_v48 }
 0x55d   : >> { %v1989_v27 = vsel %vm384_vm1, %v1968_v14, -inf  ;;  %v1987_v28 = vsel %vm384_vm1, %v1967_v15, -inf }
 0x55e   : >> { %v1750_v4 = vpop.permute.xlu1 %1749  ;;  %v1743_v7 = vpop.permute.xlu0 %1742  ;;  %v1990_v45 = vmax.f32 %v1982_v37, %v1989_v27  ;;  %v1988_v46 = vmax.f32 %v1980_v38, %v1987_v28 }
 0x55f   : >> { %v1970_v12 = vmul.f32 %v1926_v59, %v1750_v4  ;;  %v1969_v22 = vmul.f32 %v1922_v60, %v1743_v7 }
 0x561   : >> { %v1993_v39 = vsel %vm384_vm1, %v1970_v12, -inf  ;;  %v1991_v40 = vsel %vm384_vm1, %v1969_v22, -inf }
 0x562   : >> { %v1764_v63 = vpop.permute.xlu1 %1763  ;;  %v1757_v11 = vpop.permute.xlu0 %1756  ;;  %v1994_v52 = vmax.f32 %v1986_v43, %v1993_v39  ;;  %v1992_v53 = vmax.f32 %v1984_v44, %v1991_v40 }
 0x563   : >> { %v1972_v9 = vmul.f32 %v1934_v16, %v1764_v63  ;;  %v1971_v32 = vmul.f32 %v1930_v47, %v1757_v11 }
 0x565   : >> { %v1997_v41 = vsel %vm384_vm1, %v1972_v9, -inf  ;;  %v1995_v42 = vsel %vm384_vm1, %v1971_v32, -inf }
 0x566   : >> { %v1778_v48 = vpop.permute.xlu1 %1777  ;;  %v1771_v49 = vpop.permute.xlu0 %1770  ;;  %v1998_v54 = vmax.f32 %v1990_v45, %v1997_v41  ;;  %v1996_v55 = vmax.f32 %v1988_v46, %v1995_v42 }
 0x567   : >> { %v1974_v50 = vmul.f32 %v1942_v17, %v1778_v48  ;;  %v1973_v51 = vmul.f32 %v1938_v18, %v1771_v49 }
 0x568   : >> { %v2003_v60 = vmax.f32 %v1996_v55, %v1998_v54 }
 0x569   : >> { %v2001_v56 = vsel %vm384_vm1, %v1974_v50, -inf  ;;  %v1999_v57 = vsel %vm384_vm1, %v1973_v51, -inf }
 0x56a   : >> { %v2002_v58 = vmax.f32 %v1994_v52, %v2001_v56  ;;  %v2000_v59 = vmax.f32 %v1992_v53, %v1999_v57  ;;  %v2170_v4 = vpop.permute.xlu1 (%p1653_p11), %2169 }
 0x56b   : > { %2172 = vst.msk [vmem:[%s3864_s7] sm:$0xff] (%p1653_p11), %vm1340_vm10, %v2170_v4 }
 0x56c   : >> { %v2004_v61 = vmax.f32 %v2000_v59, %v2002_v58  ;;  %1655 = sbr.rel (!%p1653_p11) target bundleno = 1231 (0x4cf), region = 127 }
 0x56e   : >> { %v2005_v29 = vmax.f32 %v2003_v60, %v2004_v61  ;;  %v2175_v7 = vpop.permute.xlu1 (%p1653_p11), %2174 }
 0x56f   : > { %2177 = vst.msk [vmem:[%s3864_s7] sm:$0xff] (%p1653_p11), %vm1347_vm13, %v2175_v7 }
 0x570   : >> { %v2006_v62 = vmax.f32 %v3158_v35, %v2005_v29  }
 0x572   : >> { %v4151_v35 = vmov %v2006_v62  ;;  %v2081_v3 = vmul.f32 (%p1653_p11), %v2006_v62, %v2006_v62  ;;  %v2007_v5 = vmul.f32 (%p1653_p11), %v2006_v62, %v3628_v13 }
 0x574   : > { %2587 = vmatmul.mubr.msk.f32.vlgmr.msra.gmra.mrb[14].mxu0 %vm384_vm1, %v2081_v3  ;;  %2582 = vmatmul.mubr.msk.f32.vlgmr.msra.gmra.mrb[10].mxu1 %vm384_vm1, %v2007_v5 }
 0x647   : > { %v2151_v8 = vpop.f32.mrb[14].mxu0  ;;  %v2077_v30 = vpop.f32.mrb[10].mxu1 }
 0x648   : > { %2156 = vrot.lane.b32.xlu0 %v2151_v8, %s3177_s12  ;;  %v2588_v19 = vpop.f32.mrb[15].mxu0  ;;  %v2583_v0 = vpop.f32.mrb[11].mxu1 }
 0x6ba   : > { %v2157_v31 = vpop.permute.xlu0 %2156 }
 0x6bb   : > { %v2159_v13 = vmul.f32 %v2157_v31, %v3796_v10 }
 0x6bd   : > { %v2160_v35 = vmax.f32 %v2159_v13, 1e-16 }
 0x6bf   : > { %2854 = vrsqrt.f32 %v2160_v35 }
 0x6c9   : > { %v2855_v33 = vpop.eup %2854 }
 0x6ca   : > { %2163 = vrot.lane.b32.xlu0 %v2855_v33, %s3179_s9  ;;  %s2982_s9 = scalar_lea.vmem %s2981_s15, 256 }
 0x6cb   : > { %p2984_p3 = scmp.lt.s32.totalorder %s2982_s9, %s2976_s8 }
 0x6cd   : > { %p2985_p7 = por %p2984_p3, %p2983_p2 }
 0x6cf   : > { %p2986_p4 = pnand %p2985_p7, %p2979_p5 }
 0x73c   : > { %v2164_v1 = vpop.permute.xlu0 %2163 }
 0x73d   : > { %v2166_v14 = vmul.f32 %v2164_v1, %v2077_v30 }
 0x73f   : > { %2179 = vrot.lane.b32.xlu0 %v2166_v14, %s3177_s12  ;;  %s2184_s12 = scalar_lea.sflag [#allocation5], %s3575_s26 }
 0x7b1   : > { %v2180_v10 = vpop.permute.xlu0 %2179 }
 0x7b2   : > { %2182 = vst.msk [vmem:[%s3864_s7] sm:$0xff] %vm1354_vm15, %v2180_v10 }
 0x7b3   : > { %2989 = shalt.err (!%p2986_p4)
}
 0x7b4   : > { %s2990_s26 = scalar_lea.hbm %s3972_s6, 128  ;;  %s2994_s4 = scalar_lea.hbm %s4156_s2, 1536 }
 0x7b5   : > { %p2991_p1 = scmp.ne.s32.totalorder %s3972_s6, %s2990_s26  ;;  %p2995_p10 = scmp.lt.u32.totalorder %s3972_s6, %s4156_s2 }
 0x7b6   : > { %p2996_p8 = scmp.lt.u32.totalorder %s2994_s4, %s2990_s26  ;;  %p2998_p13 = scmp.lt.u32.totalorder %s2990_s26, %s3972_s6 }
 0x7b7   : > { %p2992_p12 = pnand %p2991_p1, %p4157_p6 }
 0x7b8   : > { %p2997_p11 = por %p2996_p8, %p2995_p10 }
 0x7b9   : > { %p2993_p0 = pneg %p2992_p12 }
 0x7ba   : > { %p2999_p9 = por %p2998_p13, %p2997_p11 }
 0x7bc   : > { %p3000_p5 = pnand %p2999_p9, %p2993_p0 }
 0x7be   : > { %3003 = shalt.err (!%p3000_p5)
}
 0x7bf   : > { %2647 = dma.vmem_to_hbm [thread:$0]  (%p4157_p6), %s3974_s19, 128, %s3972_s6, %s2184_s12  }
 0x7c0 PF: > { %s4158_s24 = sld [smem:[#allocation18_spill]]  ;;  %p2667_p2 = scmp.ge.s32.totalorder %s3154_s30, 2 }
 0x7c1   : > { %p4159_p3 = scmp.ne.s32.totalorder %s4118_s5, 0 }
 0x7c3   : > { %p2663_p7 = pnand %p2667_p2, %p4159_p3 }
 0x7c6   : > { %s2213_s21 = sand.u32 1, %s4158_s24  }
 0x7c7   : > { %s2214_s1 = scalar_lea.sflag [#allocation5], %s2213_s21 }
 0x7c8   : > { %3089 = dma.done.wait (!%p2663_p7), %s2214_s1, 128  }
 0x7c9   : > { %3091 = vsyncadd (!%p2663_p7), %s2214_s1, 4294967168  ;;  %s26_s30 = sadd.s32 1, %s3154_s30   ;;  %s4161_s18 = sld [smem:[#allocation17_spill]] }
 0x7ca   : > { %p4005_p4 = scmp.ge.s32.totalorder %s26_s30, 14   ;;  %s4162_s5 = sld [smem:[#allocation24_spill]] }
 0x7cb   : > { %s4163_s6 = sld [smem:[#allocation25_spill]]  ;;  %s4164_s0 = sld [smem:[#allocation29_spill]] }
 0x7cc   : > { %s4165_s15 = smov %s3098_s16  ;;  %s4166_s16 = smov %s3102_s17 }
 0x7cd   : > { %s4167_s17 = smov %s3514_s10  ;;  %s4168_s19 = smov %s3114_s20 }
 0x7ce   : > { %s4169_s20 = smov %s3430_s25  ;;  %s4170_s21 = smov %s3122_s22 }
 0x7cf   : > { %s4171_s22 = smov %s3126_s23  ;;  %s4172_s23 = smov %s3435_s3 }
 0x7d0   : > { %s4173_s24 = smov %s3142_s27  ;;  %s4174_s25 = smov %s3146_s28 }
 0x7d1   : > { %s4175_s26 = smov %s3150_s29  ;;  %s4176_s27 = smov %s4162_s5 }
 0x7d2   : > { %s4177_s28 = smov %s4163_s6  ;;  %s4178_s29 = smov %s4164_s0 }
 0x7d3   :  { %25 = sbr.rel (!%p4005_p4) target bundleno = 21 (0x15), region = 138 }
 0x7da   :  { %2219 = vsyncpa [#allocation4], 1 }
 0x7db   :  { %2221 = vsyncpa [#allocation4 + $0x1], 1 }
 0x7dc   :  { %2222 = vsyncpa [#allocation7], 1 }
 0x7dd   :  { %2224 = vsyncpa [#allocation7 + $0x1], 1 }
 0x7de   :  { %2225 = vsyncpa [#allocation10], 1 }
 0x7df   :  { %2227 = vsyncpa [#allocation10 + $0x1], 1 }
 0x7e0   :  { %2228 = vsyncpa [#allocation5], 1 }
 0x7e1   :  { %2230 = vsyncpa [#allocation5 + $0x1], 1 }

</bundles_post_ra>
